<compile_context>
chip_gen: v6e
topology: v6e:2x2x1
jax: 0.10.0
libtpu: 0.0.40
codegen_flags: <defaults>
</compile_context>

<pallas_src>
import numpy as np
import jax
import jax.numpy as jnp
from jax.experimental import pallas as pl
from jax.experimental.pallas import tpu as pltpu

# ---- model hyper-parameters (the `params` dict / action_space of __init__) ----
BATCH = 64                  # small PPO minibatch for the demo run
STATE_SPACE = 32
HIDDEN_ACTOR = 32           # params['hidden_size_actor']
HIDDEN_CRITIC = 32          # params['hidden_size_critic']
N_LAYERS = 2                # params['n_layers_actor'] == params['n_layers_critic']
ACTION_DIMS = (6, 4)        # [space.n for space in action_space]
K = len(ACTION_DIMS)
NHEAD = sum(ACTION_DIMS)    # fused head width (10)
WD = HIDDEN_ACTOR + HIDDEN_CRITIC   # fused trunk / slab lane width (64)
OUT_W = 2 * K + 1           # logp(K) | entropy(K) | value(1)
OUT_PAD = 128               # lane-dense output width (wrapper slices :OUT_W)

assert all(n > 0 for n in ACTION_DIMS), "empty action space would break log-softmax"
assert NHEAD + 1 <= WD, "fused head+value columns must fit in the trunk lane width"

SEG_START = tuple(int(np.cumsum((0,) + ACTION_DIMS)[k]) for k in range(K))  # (0, 6)


def _align16(n):
    return ((n + 15) // 16) * 16


# Packed input: [state (32) | fused action cols (K) | zero pad] -> 48 lanes.
IN_W = _align16(STATE_SPACE + K)

# ---- parameter-slab row layout (16-row aligned sections: bf16 native tiling,
#      one [SLAB_ROWS, WD] bf16 array == one grid-invariant DMA) ----
OFF_W0 = 0                              # [IN_W, WD]   (action/pad rows are zero)
OFF_B0 = OFF_W0 + IN_W                  # row 0 of a 16-row section
_off = OFF_B0 + 16
OFF_WH, OFF_BH = [], []
for _i in range(N_LAYERS):
    OFF_WH.append(_off); _off += _align16(WD)   # block-diag [WD, WD]
    OFF_BH.append(_off); _off += 16
OFF_WOUT = _off; _off += _align16(WD)   # heads (cols 0..NHEAD-1) + value (col NHEAD)
OFF_BOUT = _off; _off += 16
SLAB_ROWS = _off                        # 304 rows * 64 lanes * 2B = 38 KiB


def actor_critic_kernel(x_ref, slab_ref, out_ref):
    x = x_ref[...]                                   # [TB, IN_W] f32
    xb = x.astype(jnp.bfloat16)

    # ---------------- fused actor|critic trunk: 3 bf16 matmuls ----------------
    w0 = slab_ref[OFF_W0:OFF_W0 + IN_W, :]           # [IN_W, WD] bf16
    b0 = slab_ref[OFF_B0:OFF_B0 + 1, :].astype(jnp.float32)
    h = jnp.dot(xb, w0, preferred_element_type=jnp.float32) + b0
    for i in range(N_LAYERS):
        wh = slab_ref[OFF_WH[i]:OFF_WH[i] + WD, :]   # block-diag [WD, WD]
        bh = slab_ref[OFF_BH[i]:OFF_BH[i] + 1, :].astype(jnp.float32)
        h = jnp.tanh(jnp.dot(h.astype(jnp.bfloat16), wh,
                             preferred_element_type=jnp.float32) + bh)

    # ------- fused heads + critic value layer: one matmul -> z [TB, WD] -------
    # lanes 0..NHEAD-1: all head logits; lane NHEAD: state value; rest: 0.
    wout = slab_ref[OFF_WOUT:OFF_WOUT + WD, :]
    bout = slab_ref[OFF_BOUT:OFF_BOUT + 1, :].astype(jnp.float32)
    z = jnp.dot(h.astype(jnp.bfloat16), wout,
                preferred_element_type=jnp.float32) + bout

    # lane-index vectors (hoisted; built from iota -> no captured array consts)
    col = jax.lax.broadcasted_iota(jnp.int32, (1, WD), 1)         # [1, WD]
    colf = col.astype(jnp.float32)
    col_out = jax.lax.broadcasted_iota(jnp.int32, (1, OUT_PAD), 1)  # [1, OUT_PAD]

    # value column (lane NHEAD), extracted without an extra MXU pass
    value = jnp.sum(jnp.where(col == NHEAD, z, 0.0), axis=-1, keepdims=True)

    # output slab [TB, OUT_PAD]: cols 0..K-1 logp, K..2K-1 entropy, 2K value
    out = jnp.where(col_out == 2 * K, value, 0.0)

    # ------- per-head masked log-softmax + taken-action logp + entropy -------
    for k in range(K):
        c0, nk = SEG_START[k], ACTION_DIMS[k]
        seg = (col >= c0) & (col < c0 + nk)                        # [1, WD]
        mk = jnp.max(jnp.where(seg, z, -jnp.inf), axis=-1, keepdims=True)
        ek = jnp.where(seg, jnp.exp(z - mk), 0.0)                  # masked exp
        sk = jnp.sum(ek, axis=-1, keepdims=True)
        lse = mk + jnp.log(sk)
        logp = z - lse                                             # valid on seg lanes
        # taken action: fused column index (c0 + a_k) was packed into input lane
        tcol = x[:, STATE_SPACE + k:STATE_SPACE + k + 1]           # [TB, 1]
        logp_sel = jnp.sum(jnp.where(colf == tcol, logp, 0.0),
                           axis=-1, keepdims=True)
        ent = -jnp.sum(ek * logp, axis=-1, keepdims=True) / sk     # -sum(p*logp)
        out = out + jnp.where(col_out == k, logp_sel, 0.0)
        out = out + jnp.where(col_out == K + k, ent, 0.0)

    out_ref[...] = out                                             # one dense store


def _default_grid_steps():
    # v5e/v6e: 1 TensorCore  -> single grid step (minimize fixed per-step cost)
    # v7x:     2 TensorCores -> 2 parallel steps, one batch half per core
    try:
        kind = jax.devices()[0].device_kind.lower()
    except Exception:
        kind = ""
    return 2 if "v7" in kind else 1


def pack_inputs(state, actions):
    """Fold actions into the state tensor: one [B, IN_W] input, one DMA."""
    B = state.shape[0]
    seg_start = jnp.asarray(np.asarray(SEG_START, np.float32))
    act_cols = actions.astype(jnp.float32) + seg_start[None, :]     # c_k + a_k
    x = jnp.zeros((B, IN_W), jnp.float32)
    x = x.at[:, :STATE_SPACE].set(state)
    x = x.at[:, STATE_SPACE:STATE_SPACE + K].set(act_cols)
    return x


def evaluate_pallas(state, actions, slab, grid_steps=None):
    B = state.shape[0]
    if grid_steps is None:
        grid_steps = _default_grid_steps()
    if B % grid_steps != 0 or (grid_steps > 1 and (B // grid_steps) % 8 != 0):
        grid_steps = 1
    tile_b = B // grid_steps
    x = pack_inputs(state, actions)

    out = pl.pallas_call(
        actor_critic_kernel,
        out_shape=jax.ShapeDtypeStruct((B, OUT_PAD), jnp.float32),
        grid_spec=pltpu.PrefetchScalarGridSpec(
            num_scalar_prefetch=0,
            grid=(grid_steps,),
            in_specs=[
                pl.BlockSpec((tile_b, IN_W), lambda i: (i, 0)),
                pl.BlockSpec((SLAB_ROWS, WD), lambda i: (0, 0)),  # grid-invariant
            ],
            out_specs=pl.BlockSpec((tile_b, OUT_PAD), lambda i: (i, 0)),
        ),
        compiler_params=pltpu.CompilerParams(
            dimension_semantics=("parallel",)),                    # 2 TCs on v7x
    )(x, slab)
    logp = out[:, :K]
    ent = out[:, K:2 * K]
    val = out[:, 2 * K:2 * K + 1]
    return logp, val, ent


# ---------------- host-side parameter packing (one bf16 slab) ----------------
def pack_params(p):
    slab = np.zeros((SLAB_ROWS, WD), np.float32)
    slab[OFF_W0:OFF_W0 + STATE_SPACE, :HIDDEN_ACTOR] = np.asarray(p['aW0'])
    slab[OFF_W0:OFF_W0 + STATE_SPACE, HIDDEN_ACTOR:] = np.asarray(p['cW0'])
    slab[OFF_B0, :HIDDEN_ACTOR] = np.asarray(p['ab0'])[0]
    slab[OFF_B0, HIDDEN_ACTOR:] = np.asarray(p['cb0'])[0]
    for i in range(N_LAYERS):
        slab[OFF_WH[i]:OFF_WH[i] + HIDDEN_ACTOR, :HIDDEN_ACTOR] = np.asarray(p['aWh'][i])
        slab[OFF_WH[i] + HIDDEN_ACTOR:OFF_WH[i] + WD, HIDDEN_ACTOR:] = np.asarray(p['cWh'][i])
        slab[OFF_BH[i], :HIDDEN_ACTOR] = np.asarray(p['abh'][i])[0]
        slab[OFF_BH[i], HIDDEN_ACTOR:] = np.asarray(p['cbh'][i])[0]
    c = 0
    for k, nk in enumerate(ACTION_DIMS):
        slab[OFF_WOUT:OFF_WOUT + HIDDEN_ACTOR, c:c + nk] = np.asarray(p['headW'][k])
        slab[OFF_BOUT, c:c + nk] = np.asarray(p['headb'][k])[0]
        c += nk
    slab[OFF_WOUT + HIDDEN_ACTOR:OFF_WOUT + WD, NHEAD:NHEAD + 1] = np.asarray(p['cWl'])
    slab[OFF_BOUT, NHEAD] = float(np.asarray(p['cbl'])[0, 0])
    return jnp.asarray(slab, dtype=jnp.bfloat16)


def evaluate_reference(state, actions, p):
    """Pure-JAX f32 reference of ActorCritic.evaluate (unfused, per head)."""
    h = state @ p['aW0'] + p['ab0']
    for i in range(N_LAYERS):
        h = jnp.tanh(h @ p['aWh'][i] + p['abh'][i])
    logps, ents = [], []
    for k, nk in enumerate(ACTION_DIMS):
        logits = h @ p['headW'][k] + p['headb'][k]
        logp = jax.nn.log_softmax(logits, axis=-1)
        probs = jnp.exp(logp)
        logps.append(jnp.take_along_axis(logp, actions[:, k:k + 1], axis=-1)[:, 0])
        ents.append(-jnp.sum(probs * logp, axis=-1))
    c = state @ p['cW0'] + p['cb0']
    for i in range(N_LAYERS):
        c = jnp.tanh(c @ p['cWh'][i] + p['cbh'][i])
    val = c @ p['cWl'] + p['cbl']
    return jnp.stack(logps, axis=-1), val, jnp.stack(ents, axis=-1)


def init_params(key):
    ks = jax.random.split(key, 11)
    scale = 0.1
    p = {
        'aW0': scale * jax.random.normal(ks[0], (STATE_SPACE, HIDDEN_ACTOR), jnp.float32),
        'ab0': scale * jax.random.normal(ks[1], (1, HIDDEN_ACTOR), jnp.float32),
        'aWh': scale * jax.random.normal(ks[2], (N_LAYERS, HIDDEN_ACTOR, HIDDEN_ACTOR), jnp.float32),
        'abh': scale * jax.random.normal(ks[3], (N_LAYERS, 1, HIDDEN_ACTOR), jnp.float32),
        'cW0': scale * jax.random.normal(ks[4], (STATE_SPACE, HIDDEN_CRITIC), jnp.float32),
        'cb0': scale * jax.random.normal(ks[5], (1, HIDDEN_CRITIC), jnp.float32),
        'cWh': scale * jax.random.normal(ks[6], (N_LAYERS, HIDDEN_CRITIC, HIDDEN_CRITIC), jnp.float32),
        'cbh': scale * jax.random.normal(ks[7], (N_LAYERS, 1, HIDDEN_CRITIC), jnp.float32),
        'cWl': scale * jax.random.normal(ks[8], (HIDDEN_CRITIC, 1), jnp.float32),
        'cbl': scale * jax.random.normal(ks[9], (1, 1), jnp.float32),
        'headW': [],
        'headb': [],
    }
    hk = jax.random.split(ks[10], 2 * K)
    for k, nk in enumerate(ACTION_DIMS):
        p['headW'].append(scale * jax.random.normal(hk[2 * k], (HIDDEN_ACTOR, nk), jnp.float32))
        p['headb'].append(scale * jax.random.normal(hk[2 * k + 1], (1, nk), jnp.float32))
    return p


if __name__ == "__main__":
    key = jax.random.PRNGKey(0)
    k_params, k_state, k_act = jax.random.split(key, 3)

    params = init_params(k_params)
    slab = pack_params(params)
    state = jax.random.normal(k_state, (BATCH, STATE_SPACE), jnp.float32)
    act_keys = jax.random.split(k_act, K)
    actions = jnp.stack(
        [jax.random.randint(act_keys[k], (BATCH,), 0, ACTION_DIMS[k], jnp.int32)
         for k in range(K)], axis=-1)                                 # [B, K]

    logp, val, ent = evaluate_pallas(state, actions, slab)
    jax.block_until_ready((logp, val, ent))

    logp_ref, val_ref, ent_ref = evaluate_reference(state, actions, params)
    # bf16 weights (f32 accumulation) -> tolerance loosened per perf review.
    assert logp.shape == (BATCH, K) and val.shape == (BATCH, 1) and ent.shape == (BATCH, K)
    assert jnp.allclose(logp, logp_ref, atol=3e-2, rtol=3e-2), "log-prob mismatch"
    assert jnp.allclose(val, val_ref, atol=3e-2, rtol=3e-2), "value mismatch"
    assert jnp.allclose(ent, ent_ref, atol=3e-2, rtol=3e-2), "entropy mismatch"

    # TODO(synk): act()/act_stochastically() need Categorical sampling (host/JAX
    # RNG glue) and forward() raises NotImplementedError in the reference module;
    # neither is implemented in-kernel.
    print("KERNEL_OK")
</pallas_src>

<mosaic_0001>
module attributes {stable_mosaic.version = 11 : i64} {
  func.func @actor_critic_kernel(%arg0: i32, %arg1: memref<64x48xf32, #tpu.memory_space<vmem>>, %arg2: memref<304x64xbf16, #tpu.memory_space<vmem>>, %arg3: memref<64x128xf32, #tpu.memory_space<vmem>>) attributes {dimension_semantics = [#tpu.dimension_semantics<parallel>], iteration_bounds = array<i64: 1>, scalar_prefetch = 0 : i64, scratch_operands = 0 : i64, tpu.core_type = #tpu.core_type<tc>, window_params = [{transform_indices = @transform_0, window_bounds = array<i64: 64, 48>}, {pipeline_mode = #tpu.pipeline_mode<synchronous>, transform_indices = @transform_1, window_bounds = array<i64: 304, 64>}, {transform_indices = @transform_2, window_bounds = array<i64: 64, 128>}]} {
    %c0 = arith.constant 0 : index
    %c0_0 = arith.constant 0 : index
    %0 = vector.load %arg1[%c0, %c0_0] : memref<64x48xf32, #tpu.memory_space<vmem>>, vector<64x48xf32>
    %1 = arith.truncf %0 : vector<64x48xf32> to vector<64x48xbf16>
    %c0_1 = arith.constant 0 : index
    %c0_2 = arith.constant 0 : index
    %2 = vector.load %arg2[%c0_1, %c0_2] : memref<304x64xbf16, #tpu.memory_space<vmem>>, vector<48x64xbf16>
    %c48 = arith.constant 48 : index
    %c0_3 = arith.constant 0 : index
    %3 = vector.load %arg2[%c48, %c0_3] : memref<304x64xbf16, #tpu.memory_space<vmem>>, vector<1x64xbf16>
    %4 = arith.extf %3 : vector<1x64xbf16> to vector<1x64xf32>
    %cst = arith.constant dense<0.000000e+00> : vector<64x64xf32>
    %5 = tpu.matmul %1, %2, %cst {dimension_numbers = #tpu.dot_dimension_numbers<[1], [0], [0], [1], [0, 0, 1, 1], [], []>} : vector<64x48xbf16>, vector<48x64xbf16>, vector<64x64xf32> -> vector<64x64xf32>
    %6 = vector.broadcast %4 : vector<1x64xf32> to vector<64x64xf32>
    %7 = arith.addf %5, %6 : vector<64x64xf32>
    %c64 = arith.constant 64 : index
    %c0_4 = arith.constant 0 : index
    %8 = vector.load %arg2[%c64, %c0_4] : memref<304x64xbf16, #tpu.memory_space<vmem>>, vector<64x64xbf16>
    %c128 = arith.constant 128 : index
    %c0_5 = arith.constant 0 : index
    %9 = vector.load %arg2[%c128, %c0_5] : memref<304x64xbf16, #tpu.memory_space<vmem>>, vector<1x64xbf16>
    %10 = arith.extf %9 : vector<1x64xbf16> to vector<1x64xf32>
    %11 = arith.truncf %7 : vector<64x64xf32> to vector<64x64xbf16>
    %cst_6 = arith.constant dense<0.000000e+00> : vector<64x64xf32>
    %12 = tpu.matmul %11, %8, %cst_6 {dimension_numbers = #tpu.dot_dimension_numbers<[1], [0], [0], [1], [0, 0, 1, 1], [], []>} : vector<64x64xbf16>, vector<64x64xbf16>, vector<64x64xf32> -> vector<64x64xf32>
    %13 = vector.broadcast %10 : vector<1x64xf32> to vector<64x64xf32>
    %14 = arith.addf %12, %13 : vector<64x64xf32>
    %15 = math.tanh %14 : vector<64x64xf32>
    %c144 = arith.constant 144 : index
    %c0_7 = arith.constant 0 : index
    %16 = vector.load %arg2[%c144, %c0_7] : memref<304x64xbf16, #tpu.memory_space<vmem>>, vector<64x64xbf16>
    %c208 = arith.constant 208 : index
    %c0_8 = arith.constant 0 : index
    %17 = vector.load %arg2[%c208, %c0_8] : memref<304x64xbf16, #tpu.memory_space<vmem>>, vector<1x64xbf16>
    %18 = arith.extf %17 : vector<1x64xbf16> to vector<1x64xf32>
    %19 = arith.truncf %15 : vector<64x64xf32> to vector<64x64xbf16>
    %cst_9 = arith.constant dense<0.000000e+00> : vector<64x64xf32>
    %20 = tpu.matmul %19, %16, %cst_9 {dimension_numbers = #tpu.dot_dimension_numbers<[1], [0], [0], [1], [0, 0, 1, 1], [], []>} : vector<64x64xbf16>, vector<64x64xbf16>, vector<64x64xf32> -> vector<64x64xf32>
    %21 = vector.broadcast %18 : vector<1x64xf32> to vector<64x64xf32>
    %22 = arith.addf %20, %21 : vector<64x64xf32>
    %23 = math.tanh %22 : vector<64x64xf32>
    %c224 = arith.constant 224 : index
    %c0_10 = arith.constant 0 : index
    %24 = vector.load %arg2[%c224, %c0_10] : memref<304x64xbf16, #tpu.memory_space<vmem>>, vector<64x64xbf16>
    %c288 = arith.constant 288 : index
    %c0_11 = arith.constant 0 : index
    %25 = vector.load %arg2[%c288, %c0_11] : memref<304x64xbf16, #tpu.memory_space<vmem>>, vector<1x64xbf16>
    %26 = arith.extf %25 : vector<1x64xbf16> to vector<1x64xf32>
    %27 = arith.truncf %23 : vector<64x64xf32> to vector<64x64xbf16>
    %cst_12 = arith.constant dense<0.000000e+00> : vector<64x64xf32>
    %28 = tpu.matmul %27, %24, %cst_12 {dimension_numbers = #tpu.dot_dimension_numbers<[1], [0], [0], [1], [0, 0, 1, 1], [], []>} : vector<64x64xbf16>, vector<64x64xbf16>, vector<64x64xf32> -> vector<64x64xf32>
    %29 = vector.broadcast %26 : vector<1x64xf32> to vector<64x64xf32>
    %30 = arith.addf %28, %29 : vector<64x64xf32>
    %31 = tpu.iota {dimensions = array<i32: 1>} : vector<1x64xi32>
    %32 = arith.sitofp %31 : vector<1x64xi32> to vector<1x64xf32>
    %33 = tpu.iota {dimensions = array<i32: 1>} : vector<1x128xi32>
    %c10_i32 = arith.constant 10 : i32
    %34 = vector.broadcast %c10_i32 : i32 to vector<1x64xi32>
    %35 = arith.cmpi eq, %31, %34 : vector<1x64xi32>
    %cst_13 = arith.constant 0.000000e+00 : f32
    %36 = vector.shape_cast %35 : vector<1x64xi1> to vector<1x64xi1>
    %37 = vector.broadcast %36 : vector<1x64xi1> to vector<64x64xi1>
    %38 = vector.broadcast %cst_13 : f32 to vector<64x64xf32>
    %39 = arith.select %37, %30, %38 : vector<64x64xi1>, vector<64x64xf32>
    %cst_14 = arith.constant dense<0.000000e+00> : vector<64xf32>
    %40 = vector.multi_reduction <add>, %39, %cst_14 [1] : vector<64x64xf32> to vector<64xf32>
    %41 = vector.shape_cast %40 : vector<64xf32> to vector<64x1xf32>
    %c4_i32 = arith.constant 4 : i32
    %42 = vector.broadcast %c4_i32 : i32 to vector<1x128xi32>
    %43 = arith.cmpi eq, %33, %42 : vector<1x128xi32>
    %cst_15 = arith.constant 0.000000e+00 : f32
    %44 = vector.shape_cast %43 : vector<1x128xi1> to vector<1x128xi1>
    %45 = vector.broadcast %44 : vector<1x128xi1> to vector<64x128xi1>
    %46 = vector.shape_cast %41 : vector<64x1xf32> to vector<64x1xf32>
    %47 = vector.broadcast %46 : vector<64x1xf32> to vector<64x128xf32>
    %48 = vector.broadcast %cst_15 : f32 to vector<64x128xf32>
    %49 = arith.select %45, %47, %48 : vector<64x128xi1>, vector<64x128xf32>
    %c0_i32 = arith.constant 0 : i32
    %50 = vector.broadcast %c0_i32 : i32 to vector<1x64xi32>
    %51 = arith.cmpi sge, %31, %50 : vector<1x64xi32>
    %c6_i32 = arith.constant 6 : i32
    %52 = vector.broadcast %c6_i32 : i32 to vector<1x64xi32>
    %53 = arith.cmpi slt, %31, %52 : vector<1x64xi32>
    %54 = arith.andi %51, %53 : vector<1x64xi1>
    %cst_16 = arith.constant 0xFF800000 : f32
    %55 = vector.shape_cast %54 : vector<1x64xi1> to vector<1x64xi1>
    %56 = vector.broadcast %55 : vector<1x64xi1> to vector<64x64xi1>
    %57 = vector.broadcast %cst_16 : f32 to vector<64x64xf32>
    %58 = arith.select %56, %30, %57 : vector<64x64xi1>, vector<64x64xf32>
    %cst_17 = arith.constant dense<0xFF800000> : vector<64xf32>
    %59 = vector.multi_reduction <maximumf>, %58, %cst_17 [1] : vector<64x64xf32> to vector<64xf32>
    %60 = vector.shape_cast %59 : vector<64xf32> to vector<64x1xf32>
    %61 = vector.broadcast %60 : vector<64x1xf32> to vector<64x64xf32>
    %62 = arith.subf %30, %61 : vector<64x64xf32>
    %63 = math.exp %62 : vector<64x64xf32>
    %cst_18 = arith.constant 0.000000e+00 : f32
    %64 = vector.shape_cast %54 : vector<1x64xi1> to vector<1x64xi1>
    %65 = vector.broadcast %64 : vector<1x64xi1> to vector<64x64xi1>
    %66 = vector.broadcast %cst_18 : f32 to vector<64x64xf32>
    %67 = arith.select %65, %63, %66 : vector<64x64xi1>, vector<64x64xf32>
    %cst_19 = arith.constant dense<0.000000e+00> : vector<64xf32>
    %68 = vector.multi_reduction <add>, %67, %cst_19 [1] : vector<64x64xf32> to vector<64xf32>
    %69 = vector.shape_cast %68 : vector<64xf32> to vector<64x1xf32>
    %70 = math.log %69 : vector<64x1xf32>
    %71 = arith.addf %60, %70 : vector<64x1xf32>
    %72 = vector.broadcast %71 : vector<64x1xf32> to vector<64x64xf32>
    %73 = arith.subf %30, %72 : vector<64x64xf32>
    %74 = vector.extract_strided_slice %0 {offsets = [0, 32], sizes = [64, 1], strides = [1, 1]} : vector<64x48xf32> to vector<64x1xf32>
    %75 = vector.broadcast %32 : vector<1x64xf32> to vector<64x64xf32>
    %76 = vector.broadcast %74 : vector<64x1xf32> to vector<64x64xf32>
    %77 = arith.cmpf oeq, %75, %76 : vector<64x64xf32>
    %cst_20 = arith.constant 0.000000e+00 : f32
    %78 = vector.broadcast %cst_20 : f32 to vector<64x64xf32>
    %79 = arith.select %77, %73, %78 : vector<64x64xi1>, vector<64x64xf32>
    %cst_21 = arith.constant dense<0.000000e+00> : vector<64xf32>
    %80 = vector.multi_reduction <add>, %79, %cst_21 [1] : vector<64x64xf32> to vector<64xf32>
    %81 = vector.shape_cast %80 : vector<64xf32> to vector<64x1xf32>
    %82 = arith.mulf %67, %73 : vector<64x64xf32>
    %cst_22 = arith.constant dense<0.000000e+00> : vector<64xf32>
    %83 = vector.multi_reduction <add>, %82, %cst_22 [1] : vector<64x64xf32> to vector<64xf32>
    %84 = vector.shape_cast %83 : vector<64xf32> to vector<64x1xf32>
    %cst_23 = arith.constant 0.000000e+00 : f32
    %85 = vector.broadcast %cst_23 : f32 to vector<64x1xf32>
    %86 = arith.subf %85, %84 : vector<64x1xf32>
    %87 = arith.divf %86, %69 : vector<64x1xf32>
    %c0_i32_24 = arith.constant 0 : i32
    %88 = vector.broadcast %c0_i32_24 : i32 to vector<1x128xi32>
    %89 = arith.cmpi eq, %33, %88 : vector<1x128xi32>
    %cst_25 = arith.constant 0.000000e+00 : f32
    %90 = vector.shape_cast %89 : vector<1x128xi1> to vector<1x128xi1>
    %91 = vector.broadcast %90 : vector<1x128xi1> to vector<64x128xi1>
    %92 = vector.shape_cast %81 : vector<64x1xf32> to vector<64x1xf32>
    %93 = vector.broadcast %92 : vector<64x1xf32> to vector<64x128xf32>
    %94 = vector.broadcast %cst_25 : f32 to vector<64x128xf32>
    %95 = arith.select %91, %93, %94 : vector<64x128xi1>, vector<64x128xf32>
    %96 = arith.addf %49, %95 : vector<64x128xf32>
    %c2_i32 = arith.constant 2 : i32
    %97 = vector.broadcast %c2_i32 : i32 to vector<1x128xi32>
    %98 = arith.cmpi eq, %33, %97 : vector<1x128xi32>
    %cst_26 = arith.constant 0.000000e+00 : f32
    %99 = vector.shape_cast %98 : vector<1x128xi1> to vector<1x128xi1>
    %100 = vector.broadcast %99 : vector<1x128xi1> to vector<64x128xi1>
    %101 = vector.shape_cast %87 : vector<64x1xf32> to vector<64x1xf32>
    %102 = vector.broadcast %101 : vector<64x1xf32> to vector<64x128xf32>
    %103 = vector.broadcast %cst_26 : f32 to vector<64x128xf32>
    %104 = arith.select %100, %102, %103 : vector<64x128xi1>, vector<64x128xf32>
    %105 = arith.addf %96, %104 : vector<64x128xf32>
    %c6_i32_27 = arith.constant 6 : i32
    %106 = vector.broadcast %c6_i32_27 : i32 to vector<1x64xi32>
    %107 = arith.cmpi sge, %31, %106 : vector<1x64xi32>
    %c10_i32_28 = arith.constant 10 : i32
    %108 = vector.broadcast %c10_i32_28 : i32 to vector<1x64xi32>
    %109 = arith.cmpi slt, %31, %108 : vector<1x64xi32>
    %110 = arith.andi %107, %109 : vector<1x64xi1>
    %cst_29 = arith.constant 0xFF800000 : f32
    %111 = vector.shape_cast %110 : vector<1x64xi1> to vector<1x64xi1>
    %112 = vector.broadcast %111 : vector<1x64xi1> to vector<64x64xi1>
    %113 = vector.broadcast %cst_29 : f32 to vector<64x64xf32>
    %114 = arith.select %112, %30, %113 : vector<64x64xi1>, vector<64x64xf32>
    %cst_30 = arith.constant dense<0xFF800000> : vector<64xf32>
    %115 = vector.multi_reduction <maximumf>, %114, %cst_30 [1] : vector<64x64xf32> to vector<64xf32>
    %116 = vector.shape_cast %115 : vector<64xf32> to vector<64x1xf32>
    %117 = vector.broadcast %116 : vector<64x1xf32> to vector<64x64xf32>
    %118 = arith.subf %30, %117 : vector<64x64xf32>
    %119 = math.exp %118 : vector<64x64xf32>
    %cst_31 = arith.constant 0.000000e+00 : f32
    %120 = vector.shape_cast %110 : vector<1x64xi1> to vector<1x64xi1>
    %121 = vector.broadcast %120 : vector<1x64xi1> to vector<64x64xi1>
    %122 = vector.broadcast %cst_31 : f32 to vector<64x64xf32>
    %123 = arith.select %121, %119, %122 : vector<64x64xi1>, vector<64x64xf32>
    %cst_32 = arith.constant dense<0.000000e+00> : vector<64xf32>
    %124 = vector.multi_reduction <add>, %123, %cst_32 [1] : vector<64x64xf32> to vector<64xf32>
    %125 = vector.shape_cast %124 : vector<64xf32> to vector<64x1xf32>
    %126 = math.log %125 : vector<64x1xf32>
    %127 = arith.addf %116, %126 : vector<64x1xf32>
    %128 = vector.broadcast %127 : vector<64x1xf32> to vector<64x64xf32>
    %129 = arith.subf %30, %128 : vector<64x64xf32>
    %130 = vector.extract_strided_slice %0 {offsets = [0, 33], sizes = [64, 1], strides = [1, 1]} : vector<64x48xf32> to vector<64x1xf32>
    %131 = vector.broadcast %32 : vector<1x64xf32> to vector<64x64xf32>
    %132 = vector.broadcast %130 : vector<64x1xf32> to vector<64x64xf32>
    %133 = arith.cmpf oeq, %131, %132 : vector<64x64xf32>
    %cst_33 = arith.constant 0.000000e+00 : f32
    %134 = vector.broadcast %cst_33 : f32 to vector<64x64xf32>
    %135 = arith.select %133, %129, %134 : vector<64x64xi1>, vector<64x64xf32>
    %cst_34 = arith.constant dense<0.000000e+00> : vector<64xf32>
    %136 = vector.multi_reduction <add>, %135, %cst_34 [1] : vector<64x64xf32> to vector<64xf32>
    %137 = vector.shape_cast %136 : vector<64xf32> to vector<64x1xf32>
    %138 = arith.mulf %123, %129 : vector<64x64xf32>
    %cst_35 = arith.constant dense<0.000000e+00> : vector<64xf32>
    %139 = vector.multi_reduction <add>, %138, %cst_35 [1] : vector<64x64xf32> to vector<64xf32>
    %140 = vector.shape_cast %139 : vector<64xf32> to vector<64x1xf32>
    %cst_36 = arith.constant 0.000000e+00 : f32
    %141 = vector.broadcast %cst_36 : f32 to vector<64x1xf32>
    %142 = arith.subf %141, %140 : vector<64x1xf32>
    %143 = arith.divf %142, %125 : vector<64x1xf32>
    %c1_i32 = arith.constant 1 : i32
    %144 = vector.broadcast %c1_i32 : i32 to vector<1x128xi32>
    %145 = arith.cmpi eq, %33, %144 : vector<1x128xi32>
    %cst_37 = arith.constant 0.000000e+00 : f32
    %146 = vector.shape_cast %145 : vector<1x128xi1> to vector<1x128xi1>
    %147 = vector.broadcast %146 : vector<1x128xi1> to vector<64x128xi1>
    %148 = vector.shape_cast %137 : vector<64x1xf32> to vector<64x1xf32>
    %149 = vector.broadcast %148 : vector<64x1xf32> to vector<64x128xf32>
    %150 = vector.broadcast %cst_37 : f32 to vector<64x128xf32>
    %151 = arith.select %147, %149, %150 : vector<64x128xi1>, vector<64x128xf32>
    %152 = arith.addf %105, %151 : vector<64x128xf32>
    %c3_i32 = arith.constant 3 : i32
    %153 = vector.broadcast %c3_i32 : i32 to vector<1x128xi32>
    %154 = arith.cmpi eq, %33, %153 : vector<1x128xi32>
    %cst_38 = arith.constant 0.000000e+00 : f32
    %155 = vector.shape_cast %154 : vector<1x128xi1> to vector<1x128xi1>
    %156 = vector.broadcast %155 : vector<1x128xi1> to vector<64x128xi1>
    %157 = vector.shape_cast %143 : vector<64x1xf32> to vector<64x1xf32>
    %158 = vector.broadcast %157 : vector<64x1xf32> to vector<64x128xf32>
    %159 = vector.broadcast %cst_38 : f32 to vector<64x128xf32>
    %160 = arith.select %156, %158, %159 : vector<64x128xi1>, vector<64x128xf32>
    %161 = arith.addf %152, %160 : vector<64x128xf32>
    %c0_39 = arith.constant 0 : index
    %c0_40 = arith.constant 0 : index
    %162 = vector.load %arg3[%c0_39, %c0_40] : memref<64x128xf32, #tpu.memory_space<vmem>>, vector<64x128xf32>
    tpu.vector_store %arg3[%c0_39, %c0_40], %161 {strides = array<i32>} : memref<64x128xf32, #tpu.memory_space<vmem>>, vector<64x128xf32>,
    return
  }
  func.func @transform_0(%arg0: i32) -> (i32, i32) {
    %c0_i32 = arith.constant 0 : i32
    %c0_i32_0 = arith.constant 0 : i32
    return %arg0, %c0_i32 : i32, i32
  }
  func.func @transform_1(%arg0: i32) -> (i32, i32) {
    %c0_i32 = arith.constant 0 : i32
    %c0_i32_0 = arith.constant 0 : i32
    %c0_i32_1 = arith.constant 0 : i32
    return %c0_i32, %c0_i32_0 : i32, i32
  }
  func.func @transform_2(%arg0: i32) -> (i32, i32) {
    %c0_i32 = arith.constant 0 : i32
    %c0_i32_0 = arith.constant 0 : i32
    return %arg0, %c0_i32 : i32, i32
  }
}

</mosaic_0001>

<bundles_post_ra>
// kernel: tpu_custom_call.1
= control target key start
LH: loop header
LB: loop body
LE: loop exit
PB: predicated region body
PF: predicated region fallthrough
CT: control target
= control target key end

     0   :  { %vm55_vm0 = vcmask 392192   ;;  %s2246_s0 = inlined_call_operand.vmem [shape: f32[64,48], index: 0, kind: input, shape index: {}]   ;;  %s2247_s1 = inlined_call_operand.vmem [shape: bf16[304,64], index: 1, kind: input, shape index: {}]   ;;  %s2248_s2 = inlined_call_operand.hbm [shape: f32[64,128], index: 2, kind: output, shape index: {}]  }
   0x1   :  { %v1303_v0 = vld [vmem:[%s2247_s1 + $0x10] sm:$0xff]   ;;  %v1304_v1 = vld [vmem:[%s2247_s1 + $0x8] sm:$0xff]   ;;  %v1497_v2 = vld [vmem:[%s2246_s0] sm:$0xff] }
   0x2   :  { %1232 = vmatprep.subr.bf16.mxu0 %v1303_v0  ;;  %v1502_v3 = vld [vmem:[%s2246_s0 + $0x8] sm:$0xff]  ;;  %v1305_v4 = vld [vmem:[%s2247_s1] sm:$0xff]   ;;  %v1512_v6 = vld [vmem:[%s2246_s0 + $0x10] sm:$0xff] }
   0x3   :  { %1233 = vmatpush3.bf16.msra.mxu0 %v1303_v0  ;;  %v21_v5 = vpack.c.bf16 %v1502_v3, %v1497_v2  ;;  %v1517_v7 = vld [vmem:[%s2246_s0 + $0x18] sm:$0xff]  ;;  %v1523_v8 = vld [vmem:[%s2246_s0 + $0x20] sm:$0xff]  ;;  %v1528_v9 = vld [vmem:[%s2246_s0 + $0x28] sm:$0xff] }
   0x4   :  { %1234 = vmatprep.subr.bf16.mxu0 %v1304_v1  ;;  %v1306_v10 = vld [vmem:[%s2247_s1 + $0x38] sm:$0xff]   ;;  %v22_v11 = vpack.c.bf16 %v1517_v7, %v1512_v6  ;;  %v23_v12 = vpack.c.bf16 %v1528_v9, %v1523_v8 }
   0x5   :  { %1238 = vmatprep.mubr.msk.bf16.mxu0 %vm55_vm0, %v21_v5  ;;  %1246 = vmatprep.subr.bf16.mxu1 %v1306_v10 }
   0x6   :  { %1247 = vmatpush3.bf16.msra.mxu1 %v1306_v10 }
   0x7   :  { %1235 = vmatpush3.bf16.msra.mxu0 %v1304_v1 }
   0x8   :  { %1236 = vmatprep.subr.bf16.mxu0 %v1305_v4 }
   0xb   :  { %1237 = vmatpush3.bf16.msra.mxu0 %v1305_v4 }
   0xe   :  { %1239 = vmatmul.mubr.msk.bf16.vlgmr.msra.gmra.mxu0 %vm55_vm0, %v22_v11 }
   0xf   :  { %7 = vsyncpa [#allocation3], 0  ;;  %1242 = vmatprep.mubr.msk.bf16.mxu0 %vm55_vm0, %v23_v12  ;;  %v1542_v13 = vld [vmem:[%s2246_s0 + $0x30] sm:$0xff]  ;;  %v1547_v14 = vld [vmem:[%s2246_s0 + $0x38] sm:$0xff]  ;;  %v33_v19 = vlaneseq  ;;  %vm175_vm1 = vcmask 523264  }
  0x10   :  { %v24_v15 = vpack.c.bf16 %v1547_v14, %v1542_v13  ;;  %v1307_v16 = vld [vmem:[%s2247_s1 + $0x30] sm:$0xff]   ;;  %v1308_v17 = vld [vmem:[%s2247_s1 + $0x28] sm:$0xff]   ;;  %v1309_v18 = vld [vmem:[%s2247_s1 + $0x20] sm:$0xff]  }
  0x11   :  { %1248 = vmatprep.subr.bf16.mxu1 %v1307_v16  ;;  %v34_v20 = vshrl.u32 %v33_v19, 7  ;;  %v31_v21 = vld [vmem:[%s2247_s1 + $0x18] sm:$0x1]  ;;  %v1310_v45 = vld [vmem:[%s2247_s1 + $0x60] sm:$0xff]   ;;  %v1312_v47 = vld [vmem:[%s2247_s1 + $0x50] sm:$0xff]  }
  0x12   :  { %1249 = vmatpush3.bf16.msra.mxu1 %v1307_v16  ;;  %v32_v22 = vunpack.c.l.bf16 %v31_v21  ;;  %1262 = vmatprep.subr.bf16.mxu0 %v1310_v45  ;;  %v1311_v46 = vld [vmem:[%s2247_s1 + $0x58] sm:$0xff]   ;;  %v1313_v48 = vld [vmem:[%s2247_s1 + $0x48] sm:$0xff]   ;;  %v141_v49 = vld [vmem:[%s2247_s1 + $0x40] sm:$0x1] }
  0x13   :  { %1250 = vmatprep.subr.bf16.mxu1 %v1308_v17  ;;  %v1565_v23 = vsub.s32 0, %v34_v20  ;;  %1263 = vmatpush3.bf16.msra.mxu0 %v1310_v45  ;;  %v142_v50 = vunpack.c.l.bf16 %v141_v49 }
  0x14   :  { %1264 = vmatprep.subr.bf16.mxu0 %v1311_v46 }
  0x15   :  { %v36_v26 = vrot.slane %v32_v22, %v1565_v23  ;;  %v150_v52 = vrot.slane %v142_v50, %v1565_v23 }
  0x16   :  { %1243 = vmatmul.mubr.msk.bf16.gmra.mxu0 %vm55_vm0, %v24_v15  ;;  %1251 = vmatpush3.bf16.msra.mxu1 %v1308_v17 }
  0x17   :  { %1252 = vmatprep.subr.bf16.mxu1 %v1309_v18  ;;  %1265 = vmatpush3.bf16.msra.mxu0 %v1311_v46 }
  0x18   :  { %1266 = vmatprep.subr.bf16.mxu0 %v1312_v47 }
  0x1a   :  { %1253 = vmatpush3.bf16.msra.mxu1 %v1309_v18 }
  0x1b   :  { %1267 = vmatpush3.bf16.msra.mxu0 %v1312_v47 }
  0x1c   :  { %1268 = vmatprep.subr.bf16.mxu0 %v1313_v48 }
  0x1f   :  { %1269 = vmatpush3.bf16.msra.mxu0 %v1313_v48 }
  0xce   :  { %v1240_v24 = vpop.f32.mrf.mxu0 }
  0xcf   :  { %v111_v32 = vadd.f32 %v1240_v24, %v36_v26 }
  0xd0   :  { %v102_v25 = vpop.f32.mrf.mxu0 }
  0xd1   :  { %v103_v30 = vadd.f32 %v102_v25, %v36_v26 }
  0xd2   :  { %v1241_v27 = vpop.f32.mrf.mxu0 }
  0xd3   :  { %v114_v28 = vadd.f32 %v1241_v27, %v36_v26  ;;  %v1315_v27 = vld [vmem:[%s2247_s1 + $0x80] sm:$0xff]  }
  0xd4   :  { %v105_v29 = vpop.f32.mrf.mxu0 }
  0xd5   :  { %v106_v31 = vadd.f32 %v105_v29, %v36_v26  ;;  %v144_v35 = vpack.c.bf16 %v114_v28, %v111_v32  ;;  %v1316_v28 = vld [vmem:[%s2247_s1 + $0x78] sm:$0xff]   ;;  %v1317_v29 = vld [vmem:[%s2247_s1 + $0x70] sm:$0xff]   ;;  %v269_v32 = vld [vmem:[%s2247_s1 + $0x68] sm:$0x1] }
  0xd6   :  { %v1244_v33 = vpop.f32.mrf.mxu0 }
  0xd7   :  { %v143_v34 = vpack.c.bf16 %v106_v31, %v103_v30  ;;  %v127_v37 = vadd.f32 %v1244_v33, %v36_v26  ;;  %v1468_v30 = vmov 32   ;;  %v1469_v31 = vmov 33  }
  0xd8   :  { %v118_v36 = vpop.f32.mrf.mxu0  ;;  %1300 = vset.pattern.permute.xlu1 %v1468_v30  ;;  %1299 = vset.pattern.permute.xlu0 %v1468_v30  ;;  %v270_v33 = vunpack.c.l.bf16 %v269_v32 }
  0xd9   :  { %1254 = vmatprep.mubr.msk.bf16.mxu1 %vm175_vm1, %v143_v34  ;;  %v119_v39 = vadd.f32 %v118_v36, %v36_v26  ;;  %688 = vperm.xlu1 %1300, %v1502_v3  }
  0xda   :  { %v1245_v38 = vpop.f32.mrf.mxu0  ;;  %1255 = vmatmul.mubr.msk.bf16.vlgmr.msra.gmra.mxu1 %vm175_vm1, %v144_v35  ;;  %683 = vperm.xlu0 %1299, %v1497_v2  }
  0xdb   :  { %v130_v40 = vadd.f32 %v1245_v38, %v36_v26 }
  0xdc   :  { %v121_v41 = vpop.f32.mrf.mxu0 }
  0xdd   :  { %v122_v42 = vadd.f32 %v121_v41, %v36_v26  ;;  %v146_v43 = vpack.c.bf16 %v130_v40, %v127_v37  ;;  %v1314_v26 = vld [vmem:[%s2247_s1 + $0x88] sm:$0xff]   ;;  %693 = vperm.xlu1 %1300, %v1512_v6  }
  0xde   :  { %1278 = vmatprep.subr.bf16.mxu1 %v1314_v26  ;;  %713 = vperm.xlu0 %1299, %v1542_v13  }
  0xdf   :  { %v145_v44 = vpack.c.bf16 %v122_v42, %v119_v39  ;;  %1279 = vmatpush3.bf16.msra.mxu1 %v1314_v26 }
  0xe0   :  { %1280 = vmatprep.subr.bf16.mxu1 %v1315_v27 }
  0xe1   :  { %1258 = vmatprep.mubr.msk.bf16.mxu1 %vm175_vm1, %v145_v44  ;;  %698 = vperm.xlu1 %1300, %v1517_v7  }
  0xe2   :  { %1259 = vmatmul.mubr.msk.bf16.gmra.mxu1 %vm175_vm1, %v146_v43  ;;  %1302 = vset.pattern.permute.xlu0 %v1469_v31 }
  0xe3   :  { %1281 = vmatpush3.bf16.msra.mxu1 %v1315_v27  ;;  %985 = vperm.xlu0 %1302, %v1502_v3   ;;  %v278_v3 = vrot.slane %v270_v33, %v1565_v23 }
  0xe4   :  { %1282 = vmatprep.subr.bf16.mxu1 %v1316_v28 }
  0xe5   :  { %703 = vperm.xlu1 %1300, %v1523_v8  }
  0xe7   :  { %1283 = vmatpush3.bf16.msra.mxu1 %v1316_v28 }
  0xe8   :  { %1284 = vmatprep.subr.bf16.mxu1 %v1317_v29 }
  0xe9   :  { %708 = vperm.xlu1 %1300, %v1528_v9  }
  0xeb   :  { %1285 = vmatpush3.bf16.msra.mxu1 %v1317_v29 }
  0xed   :  { %718 = vperm.xlu1 %1300, %v1547_v14  }
  0xf1   :  { %1301 = vset.pattern.permute.xlu1 %v1469_v31 }
  0xf2   :  { %981 = vperm.xlu1 %1301, %v1497_v2  }
  0xf6   :  { %989 = vperm.xlu1 %1301, %v1512_v6  }
  0xfa   :  { %993 = vperm.xlu1 %1301, %v1517_v7  }
 0x19a   :  { %v1256_v51 = vpop.f32.mrf.mxu1 }
 0x19b   :  { %v231_v57 = vadd.f32 %v1256_v51, %v150_v52 }
 0x19c   :  { %v222_v53 = vpop.f32.mrf.mxu1 }
 0x19d   :  { %v223_v54 = vadd.f32 %v222_v53, %v150_v52 }
 0x19e   :  { %v1257_v55 = vpop.f32.mrf.mxu1 }
 0x19f   :  { %v234_v56 = vadd.f32 %v1257_v55, %v150_v52  ;;  %1318 = vtanh.f32 %v223_v54 }
 0x1a0   :  { %v225_v58 = vpop.f32.mrf.mxu1 }
 0x1a1   :  { %v226_v59 = vadd.f32 %v225_v58, %v150_v52  ;;  %1320 = vtanh.f32 %v234_v56 }
 0x1a2   :  { %v1260_v60 = vpop.f32.mrf.mxu1 }
 0x1a3   :  { %1322 = vtanh.f32 %v226_v59  ;;  %v247_v61 = vadd.f32 %v1260_v60, %v150_v52  ;;  %v396_v59 = vld [vmem:[%s2247_s1 + $0x90] sm:$0x1]  ;;  %s1470_s1 = smov [#allocation2]  }
 0x1a4   :  { %1324 = vtanh.f32 %v231_v57  ;;  %v238_v62 = vpop.f32.mrf.mxu1  ;;  %v397_v60 = vunpack.c.l.bf16 %v396_v59  ;;  %s1159_s6 = sshll.u32 %s1470_s1, 4  ;;  %s1160_s6 = int_to_ptr.vmem [resolvable:$true] %s1159_s6 }
 0x1a5   :  { %v239_v63 = vadd.f32 %v238_v62, %v150_v52  ;;  %1326 = vtanh.f32 %v247_v61  ;;  %v1628_v61 = vand.u32 127, %v33_v19  ;;  %s1446_s7 = scalar_lea.vmem %s1160_s6, 1024  ;;  %p1451_p1 = scmp.lt.s32.totalorder %s1160_s6, %s1160_s6 }
 0x1a6   :  { %v1261_v0 = vpop.f32.mrf.mxu1  ;;  %v1631_v62 = vrot.slane %v397_v60, %v1565_v23  ;;  %p1447_p0 = scmp.ne.s32.totalorder %s1160_s6, %s1446_s7  ;;  %p1452_p2 = scmp.lt.s32.totalorder %s1446_s7, %s1446_s7 }
 0x1a7   :  { %v250_v1 = vadd.f32 %v1261_v0, %v150_v52  ;;  %1328 = vtanh.f32 %v239_v63  ;;  %2256 = vst [vmem:[#allocation5_spill] sm:$0xff] %v1628_v61  ;;  %vm855_vm2 = vcmp.ge.s32.totalorder %v1628_v61, 6  ;;  %vm856_vm3 = vcmp.lt.s32.totalorder %v1628_v61, 10 }
 0x1a8   :  { %v241_v4 = vpop.f32.mrf.mxu1  ;;  %vm557_vm4 = vcmp.lt.s32.totalorder %v1628_v61, 6  ;;  %vm510_vm5 = vcmp.eq.s32.totalorder %v1628_v61, 10  ;;  %vm1640_vm6 = vmand %vm855_vm2, %vm856_vm3  ;;  %p1453_p3 = por %p1452_p2, %p1451_p1 }
 0x1a9   :  { %1330 = vtanh.f32 %v250_v1  ;;  %v242_v5 = vadd.f32 %v241_v4, %v150_v52 }
 0x1aa   :  { %p1454_p4 = pnand %p1453_p3, %p1447_p0 }
 0x1ab   :  { %1332 = vtanh.f32 %v242_v5 }
 0x1ac   :  { %v1319_v10 = vpop.eup %1318 }
 0x1ae   :  { %v1321_v11 = vpop.eup %1320 }
 0x1b0   :  { %v1323_v12 = vpop.eup %1322 }
 0x1b1   :  { %v1325_v15 = vpop.eup %1324  ;;  %v271_v16 = vpack.c.bf16 %v1323_v12, %v1319_v10 }
 0x1b2   :  { %v272_v17 = vpack.c.bf16 %v1321_v11, %v1325_v15  ;;  %v1327_v18 = vpop.eup %1326 }
 0x1b3   :  { %1270 = vmatprep.mubr.msk.bf16.mxu0 %vm175_vm1, %v271_v16 }
 0x1b4   :  { %1271 = vmatmul.mubr.msk.bf16.vlgmr.msra.gmra.mxu0 %vm175_vm1, %v272_v17  ;;  %v1329_v20 = vpop.eup %1328 }
 0x1b6   :  { %v1331_v21 = vpop.eup %1330 }
 0x1b7   :  { %v274_v24 = vpack.c.bf16 %v1331_v21, %v1327_v18 }
 0x1b8   :  { %v1333_v22 = vpop.eup %1332 }
 0x1b9   :  { %v273_v25 = vpack.c.bf16 %v1333_v22, %v1329_v20 }
 0x1bb   :  { %1274 = vmatprep.mubr.msk.bf16.mxu0 %vm175_vm1, %v273_v25 }
 0x1bc   :  { %1275 = vmatmul.mubr.msk.bf16.gmra.mxu0 %vm175_vm1, %v274_v24 }
 0x274   :  { %v1272_v34 = vpop.f32.mrf.mxu0 }
 0x275   :  { %v358_v39 = vadd.f32 %v1272_v34, %v278_v3 }
 0x276   :  { %v349_v35 = vpop.f32.mrf.mxu0 }
 0x277   :  { %v350_v36 = vadd.f32 %v349_v35, %v278_v3 }
 0x278   :  { %v1273_v37 = vpop.f32.mrf.mxu0 }
 0x279   :  { %v361_v38 = vadd.f32 %v1273_v37, %v278_v3  ;;  %1334 = vtanh.f32 %v350_v36 }
 0x27a   :  { %v352_v40 = vpop.f32.mrf.mxu0 }
 0x27b   :  { %v353_v2 = vadd.f32 %v352_v40, %v278_v3  ;;  %1336 = vtanh.f32 %v361_v38 }
 0x27c   :  { %v1276_v6 = vpop.f32.mrf.mxu0 }
 0x27d   :  { %1338 = vtanh.f32 %v353_v2  ;;  %v374_v7 = vadd.f32 %v1276_v6, %v278_v3 }
 0x27e   :  { %1340 = vtanh.f32 %v358_v39  ;;  %v365_v41 = vpop.f32.mrf.mxu0 }
 0x27f   :  { %v366_v42 = vadd.f32 %v365_v41, %v278_v3  ;;  %1342 = vtanh.f32 %v374_v7 }
 0x280   :  { %v1277_v43 = vpop.f32.mrf.mxu0 }
 0x281   :  { %v377_v44 = vadd.f32 %v1277_v43, %v278_v3  ;;  %1344 = vtanh.f32 %v366_v42 }
 0x282   :  { %v368_v45 = vpop.f32.mrf.mxu0 }
 0x283   :  { %1346 = vtanh.f32 %v377_v44  ;;  %v369_v46 = vadd.f32 %v368_v45, %v278_v3 }
 0x285   :  { %1348 = vtanh.f32 %v369_v46 }
 0x286   :  { %v1335_v47 = vpop.eup %1334 }
 0x288   :  { %v1337_v48 = vpop.eup %1336 }
 0x28a   :  { %v1339_v49 = vpop.eup %1338 }
 0x28b   :  { %v1341_v50 = vpop.eup %1340  ;;  %v398_v51 = vpack.c.bf16 %v1339_v49, %v1335_v47 }
 0x28c   :  { %v399_v52 = vpack.c.bf16 %v1337_v48, %v1341_v50  ;;  %v1343_v53 = vpop.eup %1342 }
 0x28d   :  { %1286 = vmatprep.mubr.msk.bf16.mxu1 %vm175_vm1, %v398_v51 }
 0x28e   :  { %1287 = vmatmul.mubr.msk.bf16.vlgmr.msra.gmra.mxu1 %vm175_vm1, %v399_v52  ;;  %v1345_v54 = vpop.eup %1344 }
 0x290   :  { %v1347_v55 = vpop.eup %1346 }
 0x291   :  { %v401_v57 = vpack.c.bf16 %v1347_v55, %v1343_v53 }
 0x292   :  { %v1349_v56 = vpop.eup %1348 }
 0x293   :  { %v400_v58 = vpack.c.bf16 %v1349_v56, %v1345_v54 }
 0x295   :  { %1290 = vmatprep.mubr.msk.bf16.mxu1 %vm175_vm1, %v400_v58 }
 0x296   :  { %1291 = vmatmul.mubr.msk.bf16.gmra.mxu1 %vm175_vm1, %v401_v57 }
 0x34e   :  { %v1288_v63 = vpop.f32.mrf.mxu1 }
 0x34f   :  { %v1638_v0 = vadd.f32 %v1288_v63, %v1631_v62 }
 0x350   :  { %v476_v1 = vpop.f32.mrf.mxu1 }
 0x351   :  { %v563_v19 = vsel %vm557_vm4, %v1638_v0, -inf  ;;  %v515_v23 = vsel %vm510_vm5, %v1638_v0, 0.0  ;;  %v1653_v12 = vadd.f32 %v476_v1, %v1631_v62  ;;  %v862_v16 = vsel %vm1640_vm6, %v1638_v0, -inf }
 0x352   :  { %v1289_v5 = vpop.f32.mrf.mxu1  ;;  %v575_v10 = vsel %vm175_vm1, %v563_v19, -inf  ;;  %v527_v11 = vsel %vm175_vm1, %v515_v23, 0.0  ;;  %v874_v20 = vsel %vm175_vm1, %v862_v16, -inf  ;;  %v1755_v19 = vpop.permute.xlu1 %688 }
 0x353   :  { %v1656_v15 = vadd.f32 %v1289_v5, %v1631_v62  ;;  %576 = vmax.xlane.f32.xlu0 %v575_v10  ;;  %528 = vadd.xlane.f32.xlu1 %v527_v11  ;;  %v513_v24 = vsel %vm510_vm5, %v1653_v12, 0.0  ;;  %v561_v30 = vsel %vm557_vm4, %v1653_v12, -inf  ;;  %v860_v3 = vsel %vm1640_vm6, %v1653_v12, -inf }
 0x354   :  { %v479_v17 = vpop.f32.mrf.mxu1  ;;  %v521_v27 = vsel %vm175_vm1, %v513_v24, 0.0  ;;  %v569_v33 = vsel %vm175_vm1, %v561_v30, -inf  ;;  %v868_v37 = vsel %vm175_vm1, %v860_v3, -inf }
 0x355   :  { %v516_v18 = vsel %vm510_vm5, %v1656_v15, 0.0  ;;  %v564_v22 = vsel %vm557_vm4, %v1656_v15, -inf  ;;  %v1675_v28 = vadd.f32 %v479_v17, %v1631_v62  ;;  %v863_v29 = vsel %vm1640_vm6, %v1656_v15, -inf }
 0x356   :  { %v530_v21 = vsel %vm175_vm1, %v516_v18, 0.0  ;;  %v1292_v25 = vpop.f32.mrf.mxu1  ;;  %v578_v26 = vsel %vm175_vm1, %v564_v22, -inf  ;;  %v877_v32 = vsel %vm175_vm1, %v863_v29, -inf  ;;  %v1765_v16 = vpop.permute.xlu1 %693 }
 0x357   :  { %875 = vmax.xlane.f32.xlu0 %v874_v20  ;;  %531 = vadd.xlane.f32.xlu1 %v530_v21  ;;  %v562_v34 = vsel %vm557_vm4, %v1675_v28, -inf  ;;  %v1694_v38 = vadd.f32 %v1292_v25, %v1631_v62  ;;  %v861_v40 = vsel %vm1640_vm6, %v1675_v28, -inf  ;;  %v514_v2 = vsel %vm510_vm5, %v1675_v28, 0.0  ;;  %v1777_v21 = vpop.permute.xlu0 %683 }
 0x358   :  { %v492_v31 = vpop.f32.mrf.mxu1  ;;  %v572_v36 = vsel %vm175_vm1, %v562_v34, -inf  ;;  %v871_v6 = vsel %vm175_vm1, %v861_v40, -inf  ;;  %v524_v7 = vsel %vm175_vm1, %v514_v2, 0.0 }
 0x359   :  { %v567_v42 = vsel %vm557_vm4, %v1694_v38, -inf  ;;  %v866_v46 = vsel %vm1640_vm6, %v1694_v38, -inf  ;;  %v1724_v50 = vadd.f32 %v492_v31, %v1631_v62  ;;  %v519_v53 = vsel %vm510_vm5, %v1694_v38, 0.0 }
 0x35a   :  { %v1293_v35 = vpop.f32.mrf.mxu1  ;;  %v587_v44 = vsel %vm175_vm1, %v567_v42, -inf  ;;  %v886_v49 = vsel %vm175_vm1, %v866_v46, -inf  ;;  %v539_v55 = vsel %vm175_vm1, %v519_v53, 0.0 }
 0x35b   :  { %579 = vmax.xlane.f32.xlu1 %v578_v26  ;;  %522 = vadd.xlane.f32.xlu0 %v521_v27  ;;  %v1697_v39 = vadd.f32 %v1293_v35, %v1631_v62  ;;  %v565_v57 = vsel %vm557_vm4, %v1724_v50, -inf  ;;  %v517_v5 = vsel %vm510_vm5, %v1724_v50, 0.0  ;;  %v1781_v24 = vpop.permute.xlu0 %713 }
 0x35c   :  { %v495_v47 = vpop.f32.mrf.mxu1  ;;  %v581_v59 = vsel %vm175_vm1, %v565_v57, -inf  ;;  %v533_v11 = vsel %vm175_vm1, %v517_v5, 0.0 }
 0x35d   :  { %v568_v41 = vsel %vm557_vm4, %v1697_v39, -inf  ;;  %v867_v45 = vsel %vm1640_vm6, %v1697_v39, -inf  ;;  %v1727_v51 = vadd.f32 %v495_v47, %v1631_v62  ;;  %v520_v52 = vsel %vm510_vm5, %v1697_v39, 0.0 }
 0x35e   :  { %v590_v43 = vsel %vm175_vm1, %v568_v41, -inf  ;;  %v889_v48 = vsel %vm175_vm1, %v867_v45, -inf  ;;  %v542_v54 = vsel %vm175_vm1, %v520_v52, 0.0  ;;  %v864_v62 = vsel %vm1640_vm6, %v1724_v50, -inf }
 0x35f   :  { %878 = vmax.xlane.f32.xlu1 %v877_v32  ;;  %570 = vmax.xlane.f32.xlu0 %v569_v33  ;;  %v566_v56 = vsel %vm557_vm4, %v1727_v51, -inf  ;;  %v865_v60 = vsel %vm1640_vm6, %v1727_v51, -inf  ;;  %v880_v1 = vsel %vm175_vm1, %v864_v62, -inf  ;;  %v518_v23 = vsel %vm510_vm5, %v1727_v51, 0.0  ;;  %v1785_v26 = vpop.permute.xlu0 %985 }
 0x360   :  { %v584_v58 = vsel %vm175_vm1, %v566_v56, -inf  ;;  %v883_v63 = vsel %vm175_vm1, %v865_v60, -inf  ;;  %v536_v10 = vsel %vm175_vm1, %v518_v23, 0.0 }
 0x363   :  { %573 = vmax.xlane.f32.xlu1 %v572_v36  ;;  %869 = vmax.xlane.f32.xlu0 %v868_v37 }
 0x367   :  { %872 = vmax.xlane.f32.xlu1 %v871_v6  ;;  %525 = vadd.xlane.f32.xlu0 %v524_v7 }
 0x36b   :  { %591 = vmax.xlane.f32.xlu1 %v590_v43  ;;  %588 = vmax.xlane.f32.xlu0 %v587_v44 }
 0x36f   :  { %890 = vmax.xlane.f32.xlu1 %v889_v48  ;;  %887 = vmax.xlane.f32.xlu0 %v886_v49 }
 0x373   :  { %543 = vadd.xlane.f32.xlu1 %v542_v54  ;;  %540 = vadd.xlane.f32.xlu0 %v539_v55 }
 0x377   :  { %585 = vmax.xlane.f32.xlu1 %v584_v58  ;;  %582 = vmax.xlane.f32.xlu0 %v581_v59 }
 0x37b   :  { %884 = vmax.xlane.f32.xlu1 %v883_v63  ;;  %881 = vmax.xlane.f32.xlu0 %v880_v1 }
 0x38c   :  { %1001 = vperm.xlu1 %1301, %v1528_v9   ;;  %v1767_v9 = vpop.permute.xlu1 %698 }
 0x391   :  { %997 = vperm.xlu0 %1302, %v1523_v8   ;;  %v1769_v8 = vpop.permute.xlu1 %703 }
 0x395   :  { %v1771_v17 = vpop.permute.xlu1 %708 }
 0x399   :  { %v1773_v18 = vpop.permute.xlu1 %718 }
 0x39d   :  { %v1775_v20 = vpop.permute.xlu1 %981 }
 0x3a1   :  { %v1779_v22 = vpop.permute.xlu1 %989 }
 0x3a5   :  { %v1783_v25 = vpop.permute.xlu1 %993 }
 0x3b0   :  { %537 = vadd.xlane.f32.xlu1 %v536_v10  ;;  %534 = vadd.xlane.f32.xlu0 %v533_v11 }
 0x3dc   :  { %v1787_v27 = vpop.xlane.xlu0 %576  ;;  %v1789_v29 = vpop.xlane.xlu1 %528 }
 0x3dd   :  { %2259 = vst [vmem:[#allocation6_spill] sm:$0xff] %v1789_v29  ;;  %v595_v30 = vsub.f32 %v1638_v0, %v1787_v27 }
 0x3df   :  { %v605_v31 = vmul.f32 1.442695, %v595_v30 }
 0x3e0   :  { %v1793_v32 = vpop.xlane.xlu0 %875  ;;  %v1795_v33 = vpop.xlane.xlu1 %531 }
 0x3e1   :  { %2260 = vst [vmem:[#allocation7_spill] sm:$0xff] %v1795_v33  ;;  %1350 = vpow2.f32 %v605_v31  ;;  %v894_v34 = vsub.f32 %v1638_v0, %v1793_v32 }
 0x3e3   :  { %v904_v3 = vmul.f32 1.442695, %v894_v34 }
 0x3e4   :  { %v1799_v35 = vpop.xlane.xlu1 %579  ;;  %v1801_v36 = vpop.xlane.xlu0 %522 }
 0x3e5   :  { %2261 = vst [vmem:[#allocation8_spill] sm:$0xff] %v1801_v36  ;;  %1352 = vpow2.f32 %v904_v3  ;;  %v596_v2 = vsub.f32 %v1656_v15, %v1799_v35  ;;  %v1979_v36 = vcvt.s32.f32 %v1628_v61 }
 0x3e7   :  { %v607_v43 = vmul.f32 1.442695, %v596_v2  ;;  %vm723_vm7 = vcmp.eq.f32.partialorder %v1979_v36, %v1765_v16  ;;  %vm1014_vm8 = vcmp.eq.f32.partialorder %v1979_v36, %v1779_v22  ;;  %vm721_vm9 = vcmp.eq.f32.partialorder %v1979_v36, %v1777_v21 }
 0x3e8   :  { %v1803_v37 = vpop.xlane.xlu1 %878  ;;  %v1805_v40 = vpop.xlane.xlu0 %570  ;;  %vm1012_vm10 = vcmp.eq.f32.partialorder %v1979_v36, %v1775_v20  ;;  %vm724_vm11 = vcmp.eq.f32.partialorder %v1979_v36, %v1767_v9  ;;  %vm1015_vm12 = vcmp.eq.f32.partialorder %v1979_v36, %v1783_v25  ;;  %vm727_vm13 = vcmp.eq.f32.partialorder %v1979_v36, %v1781_v24 }
 0x3e9   :  { %v593_v6 = vsub.f32 %v1653_v12, %v1805_v40  ;;  %v895_v46 = vsub.f32 %v1656_v15, %v1803_v37  ;;  %vm722_vm14 = vcmp.eq.f32.partialorder %v1979_v36, %v1755_v19  ;;  %vm1013_vm15 = vcmp.eq.f32.partialorder %v1979_v36, %v1785_v26 }
 0x3ea   :  { %vm725_vm0 = vcmp.eq.f32.partialorder %v1979_v36, %v1769_v8  ;;  %vm728_vm2 = vcmp.eq.f32.partialorder %v1979_v36, %v1773_v18  ;;  %vm726_vm5 = vcmp.eq.f32.partialorder %v1979_v36, %v1771_v17 }
 0x3eb   :  { %v601_v7 = vmul.f32 1.442695, %v593_v6  ;;  %v906_v57 = vmul.f32 1.442695, %v895_v46 }
 0x3ec   :  { %v1811_v41 = vpop.xlane.xlu1 %573  ;;  %v1813_v42 = vpop.xlane.xlu0 %869 }
 0x3ed   :  { %v892_v44 = vsub.f32 %v1653_v12, %v1813_v42  ;;  %1354 = vpow2.f32 %v601_v7  ;;  %v594_v54 = vsub.f32 %v1675_v28, %v1811_v41 }
 0x3ee   :  { %v1351_v45 = vpop.eup %1350  ;;  %1356 = vpow2.f32 %v607_v43 }
 0x3ef   :  { %v900_v47 = vmul.f32 1.442695, %v892_v44  ;;  %v1821_v48 = vsel %vm557_vm4, %v1351_v45, 0.0  ;;  %v603_v1 = vmul.f32 1.442695, %v594_v54 }
 0x3f0   :  { %v1823_v49 = vpop.xlane.xlu1 %872  ;;  %v1825_v52 = vpop.xlane.xlu0 %525  ;;  %v631_v53 = vsel %vm175_vm1, %v1821_v48, 0.0 }
 0x3f1   :  { %2262 = vst [vmem:[#allocation9_spill] sm:$0xff] %v1825_v52  ;;  %v893_v55 = vsub.f32 %v1675_v28, %v1823_v49  ;;  %632 = vadd.xlane.f32.xlu0 %v631_v53  ;;  %1358 = vpow2.f32 %v900_v47 }
 0x3f2   :  { %v1353_v56 = vpop.eup %1352 }
 0x3f3   :  { %v902_v58 = vmul.f32 1.442695, %v893_v55  ;;  %v1835_v59 = vsel %vm1640_vm6, %v1353_v56, 0.0 }
 0x3f4   :  { %v1837_v60 = vpop.xlane.xlu1 %591  ;;  %v1839_v62 = vpop.xlane.xlu0 %588  ;;  %v930_v63 = vsel %vm175_vm1, %v1835_v59, 0.0 }
 0x3f5   :  { %1360 = vpow2.f32 %v902_v58  ;;  %v599_v23 = vsub.f32 %v1694_v38, %v1839_v62  ;;  %931 = vadd.xlane.f32.xlu1 %v930_v63  ;;  %v600_v46 = vsub.f32 %v1697_v39, %v1837_v60 }
 0x3f6   :  { %1362 = vpow2.f32 %v906_v57 }
 0x3f7   :  { %v613_v5 = vmul.f32 1.442695, %v599_v23  ;;  %1364 = vpow2.f32 %v603_v1 }
 0x3f8   :  { %v1845_v10 = vpop.xlane.xlu1 %890  ;;  %v1847_v11 = vpop.xlane.xlu0 %887 }
 0x3f9   :  { %v898_v30 = vsub.f32 %v1694_v38, %v1847_v11  ;;  %1366 = vpow2.f32 %v613_v5  ;;  %v899_v7 = vsub.f32 %v1697_v39, %v1845_v10 }
 0x3fa   :  { %v1355_v31 = vpop.eup %1354 }
 0x3fb   :  { %v912_v34 = vmul.f32 1.442695, %v898_v30  ;;  %v1857_v6 = vsel %vm557_vm4, %v1355_v31, 0.0  ;;  %v1357_v44 = vpop.eup %1356  ;;  %v914_v55 = vmul.f32 1.442695, %v899_v7 }
 0x3fc   :  { %v1851_v3 = vpop.xlane.xlu1 %543  ;;  %v1853_v2 = vpop.xlane.xlu0 %540  ;;  %v625_v43 = vsel %vm175_vm1, %v1857_v6, 0.0  ;;  %v1879_v63 = vsel %vm557_vm4, %v1357_v44, 0.0  ;;  %v615_v30 = vmul.f32 1.442695, %v600_v46 }
 0x3fd   :  { %2263 = vst [vmem:[#allocation10_spill] sm:$0xff] %v1851_v3  ;;  %2264 = vst [vmem:[#allocation11_spill] sm:$0xff] %v1853_v2  ;;  %1368 = vpow2.f32 %v912_v34  ;;  %626 = vadd.xlane.f32.xlu0 %v625_v43 }
 0x3fe   :  { %v1359_v45 = vpop.eup %1358  ;;  %1370 = vpow2.f32 %v914_v55 }
 0x3ff   :  { %v1871_v54 = vsel %vm1640_vm6, %v1359_v45, 0.0  ;;  %v634_v45 = vsel %vm175_vm1, %v1879_v63, 0.0 }
 0x400   :  { %v1865_v47 = vpop.xlane.xlu1 %585  ;;  %v1867_v53 = vpop.xlane.xlu0 %582  ;;  %v924_v57 = vsel %vm175_vm1, %v1871_v54, 0.0 }
 0x401   :  { %v597_v56 = vsub.f32 %v1724_v50, %v1867_v53  ;;  %925 = vadd.xlane.f32.xlu1 %v924_v57  ;;  %v598_v46 = vsub.f32 %v1727_v51, %v1865_v47 }
 0x402   :  { %v1361_v58 = vpop.eup %1360 }
 0x403   :  { %v1363_v1 = vpop.eup %1362  ;;  %v609_v23 = vmul.f32 1.442695, %v597_v56  ;;  %v1883_v5 = vsel %vm1640_vm6, %v1361_v58, 0.0 }
 0x404   :  { %v1885_v31 = vpop.xlane.xlu1 %884  ;;  %v1887_v34 = vpop.xlane.xlu0 %881  ;;  %v927_v7 = vsel %vm175_vm1, %v1883_v5, 0.0  ;;  %v1901_v57 = vsel %vm1640_vm6, %v1363_v1, 0.0 }
 0x405   :  { %v897_v43 = vsub.f32 %v1727_v51, %v1885_v31  ;;  %v896_v44 = vsub.f32 %v1724_v50, %v1887_v34  ;;  %928 = vadd.xlane.f32.xlu0 %v927_v7  ;;  %v1365_v56 = vpop.eup %1364  ;;  %1372 = vpow2.f32 %v609_v23  ;;  %635 = vadd.xlane.f32.xlu1 %v634_v45  ;;  %v933_v2 = vsel %vm175_vm1, %v1901_v57, 0.0 }
 0x406   :  { %v1367_v55 = vpop.eup %1366  ;;  %1374 = vpow2.f32 %v615_v30  ;;  %v611_v45 = vmul.f32 1.442695, %v598_v46  ;;  %v1913_v1 = vsel %vm557_vm4, %v1365_v56, 0.0 }
 0x407   :  { %v910_v58 = vmul.f32 1.442695, %v897_v43  ;;  %v908_v3 = vmul.f32 1.442695, %v896_v44  ;;  %v1905_v7 = vsel %vm557_vm4, %v1367_v55, 0.0  ;;  %v628_v43 = vsel %vm175_vm1, %v1913_v1, 0.0 }
 0x408   :  { %v643_v23 = vsel %vm175_vm1, %v1905_v7, 0.0 }
 0x409   :  { %1376 = vpow2.f32 %v910_v58  ;;  %934 = vadd.xlane.f32.xlu1 %v933_v2  ;;  %644 = vadd.xlane.f32.xlu0 %v643_v23 }
 0x40a   :  { %1378 = vpow2.f32 %v908_v3  ;;  %v1369_v30 = vpop.eup %1368 }
 0x40b   :  { %1380 = vpow2.f32 %v611_v45  ;;  %v1919_v44 = vsel %vm1640_vm6, %v1369_v30, 0.0  ;;  %v1371_v3 = vpop.eup %1370 }
 0x40c   :  { %v942_v46 = vsel %vm175_vm1, %v1919_v44, 0.0  ;;  %v1931_v45 = vsel %vm1640_vm6, %v1371_v3, 0.0 }
 0x40d   :  { %629 = vadd.xlane.f32.xlu1 %v628_v43 }
 0x411   :  { %943 = vadd.xlane.f32.xlu1 %v942_v46  ;;  %v945_v46 = vsel %vm175_vm1, %v1931_v45, 0.0 }
 0x412   :  { %v1373_v2 = vpop.eup %1372 }
 0x413   :  { %v1925_v56 = vsel %vm557_vm4, %v1373_v2, 0.0  ;;  %v1375_v55 = vpop.eup %1374 }
 0x414   :  { %v637_v58 = vsel %vm175_vm1, %v1925_v56, 0.0  ;;  %v1947_v3 = vsel %vm557_vm4, %v1375_v55, 0.0  ;;  %v1961_v55 = vpop.permute.xlu0 %997 }
 0x415   :  { %638 = vadd.xlane.f32.xlu0 %v637_v58  ;;  %v646_v33 = vsel %vm175_vm1, %v1947_v3, 0.0  ;;  %vm1016_vm3 = vcmp.eq.f32.partialorder %v1979_v36, %v1961_v55 }
 0x416   :  { %v1377_v23 = vpop.eup %1376 }
 0x417   :  { %v1379_v30 = vpop.eup %1378  ;;  %v1943_v58 = vsel %vm1640_vm6, %v1377_v23, 0.0  ;;  %v1963_v23 = vpop.permute.xlu1 %1001 }
 0x418   :  { %v1935_v43 = vsel %vm1640_vm6, %v1379_v30, 0.0  ;;  %2265 = vst [vmem:[#allocation12_spill] sm:$0xff] %v1943_v58  ;;  %v1381_v52 = vpop.eup %1380  ;;  %v939_v30 = vsel %vm175_vm1, %v1943_v58, 0.0  ;;  %vm1017_vm6 = vcmp.eq.f32.partialorder %v1979_v36, %v1963_v23 }
 0x419   :  { %v936_v2 = vsel %vm175_vm1, %v1935_v43, 0.0  ;;  %946 = vadd.xlane.f32.xlu0 %v945_v46  ;;  %v1955_v46 = vsel %vm557_vm4, %v1381_v52, 0.0 }
 0x41a   :  { %937 = vadd.xlane.f32.xlu1 %v936_v2  ;;  %2266 = vst [vmem:[#allocation13_spill] sm:$0xff] %v1955_v46  ;;  %v640_v4 = vsel %vm175_vm1, %v1955_v46, 0.0 }
 0x41d   :  { %940 = vadd.xlane.f32.xlu0 %v939_v30 }
 0x41e   :  { %647 = vadd.xlane.f32.xlu1 %v646_v33 }
 0x422   :  { %641 = vadd.xlane.f32.xlu1 %v640_v4 }
 0x433   :  { %1009 = vperm.xlu1 %1301, %v1547_v14   ;;  %1005 = vperm.xlu0 %1302, %v1542_v13  }
 0x439   :  { %v1965_v2 = vpop.xlane.xlu0 %534  ;;  %v1967_v30 = vpop.xlane.xlu1 %537 }
 0x43a   :  { %2267 = vst [vmem:[#allocation14_spill] sm:$0xff] %v1965_v2  ;;  %2268 = vst [vmem:[#allocation15_spill] sm:$0xff] %v1967_v30 }
 0x47a   :  { %v1969_v33 = vpop.xlane.xlu0 %632 }
 0x47b   :  { %2269 = vst [vmem:[#allocation16_spill] sm:$0xff] %v1969_v33  ;;  %1382 = vlog2.f32 %v1969_v33 }
 0x47e   :  { %v1972_v52 = vpop.xlane.xlu1 %931 }
 0x47f   :  { %2270 = vst [vmem:[#allocation17_spill] sm:$0xff] %v1972_v52  ;;  %1384 = vlog2.f32 %v1972_v52 }
 0x486   :  { %v1975_v4 = vpop.xlane.xlu0 %626 }
 0x487   :  { %2271 = vst [vmem:[#allocation18_spill] sm:$0xff] %v1975_v4  ;;  %1386 = vlog2.f32 %v1975_v4 }
 0x488   :  { %v1383_v14 = vpop.eup %1382 }
 0x489   :  { %v654_v13 = vmul.f32 0.6931472, %v1383_v14 }
 0x48a   :  { %v1981_v2 = vpop.xlane.xlu1 %925 }
 0x48b   :  { %v667_v30 = vadd.f32 %v654_v13, %v1787_v27  ;;  %1388 = vlog2.f32 %v1981_v2 }
 0x48c   :  { %v1385_v29 = vpop.eup %1384 }
 0x48d   :  { %v953_v33 = vmul.f32 0.6931472, %v1385_v29  ;;  %v675_v58 = vsub.f32 %v1638_v0, %v667_v30 }
 0x48e   :  { %v1988_v52 = vpop.xlane.xlu0 %928  ;;  %v1990_v4 = vpop.xlane.xlu1 %635 }
 0x48f   :  { %v731_v14 = vsel %vm723_vm7, %v675_v58, 0.0  ;;  %v763_v61 = vmul.f32 %v675_v58, %v1821_v48  ;;  %v966_v46 = vadd.f32 %v953_v33, %v1793_v32  ;;  %1390 = vlog2.f32 %v1990_v4 }
 0x490   :  { %v743_v27 = vsel %vm175_vm1, %v731_v14, 0.0 }
 0x491   :  { %744 = vadd.xlane.f32.xlu1 %v743_v27  ;;  %v775_v29 = vsel %vm175_vm1, %v763_v61, 0.0  ;;  %v974_v30 = vsub.f32 %v1638_v0, %v966_v46 }
 0x492   :  { %776 = vadd.xlane.f32.xlu0 %v775_v29  ;;  %v2000_v16 = vpop.xlane.xlu1 %934  ;;  %v2002_v13 = vpop.xlane.xlu0 %644 }
 0x493   :  { %v1022_v48 = vsel %vm1014_vm8, %v974_v30, 0.0  ;;  %1392 = vlog2.f32 %v2000_v16  ;;  %v1054_v58 = vmul.f32 %v974_v30, %v1835_v59 }
 0x494   :  { %v1034_v32 = vsel %vm175_vm1, %v1022_v48, 0.0  ;;  %v1387_v33 = vpop.eup %1386  ;;  %1394 = vlog2.f32 %v2002_v13 }
 0x495   :  { %1035 = vadd.xlane.f32.xlu1 %v1034_v32  ;;  %v650_v61 = vmul.f32 0.6931472, %v1387_v33  ;;  %v1066_v22 = vsel %vm175_vm1, %v1054_v58, 0.0 }
 0x496   :  { %v2008_v0 = vpop.xlane.xlu1 %629 }
 0x497   :  { %1396 = vlog2.f32 %v2008_v0  ;;  %v665_v46 = vadd.f32 %v650_v61, %v1805_v40 }
 0x498   :  { %v1389_v14 = vpop.eup %1388  ;;  %1398 = vlog2.f32 %v1988_v52 }
 0x499   :  { %1067 = vadd.xlane.f32.xlu1 %v1066_v22  ;;  %v949_v27 = vmul.f32 0.6931472, %v1389_v14  ;;  %v673_v59 = vsub.f32 %v1653_v12, %v665_v46 }
 0x49a   :  { %v2017_v29 = vpop.xlane.xlu1 %943 }
 0x49b   :  { %1400 = vlog2.f32 %v2017_v29  ;;  %v729_v30 = vsel %vm721_vm9, %v673_v59, 0.0  ;;  %v761_v48 = vmul.f32 %v673_v59, %v1857_v6  ;;  %v964_v32 = vadd.f32 %v949_v27, %v1813_v42 }
 0x49c   :  { %v1391_v40 = vpop.eup %1390  ;;  %v737_v58 = vsel %vm175_vm1, %v729_v30, 0.0 }
 0x49d   :  { %v656_v33 = vmul.f32 0.6931472, %v1391_v40  ;;  %738 = vadd.xlane.f32.xlu1 %v737_v58  ;;  %v769_v61 = vsel %vm175_vm1, %v761_v48, 0.0  ;;  %v972_v22 = vsub.f32 %v1653_v12, %v964_v32 }
 0x49e   :  { %770 = vadd.xlane.f32.xlu0 %v769_v61  ;;  %v2027_v21 = vpop.xlane.xlu0 %638 }
 0x49f   :  { %1402 = vlog2.f32 %v2027_v21  ;;  %v1020_v6 = vsel %vm1012_vm10, %v972_v22, 0.0  ;;  %v668_v42 = vadd.f32 %v656_v33, %v1799_v35  ;;  %v1052_v27 = vmul.f32 %v972_v22, %v1871_v54 }
 0x4a0   :  { %v1393_v46 = vpop.eup %1392  ;;  %v1028_v14 = vsel %vm175_vm1, %v1020_v6, 0.0 }
 0x4a1   :  { %v955_v59 = vmul.f32 0.6931472, %v1393_v46  ;;  %1029 = vadd.xlane.f32.xlu1 %v1028_v14  ;;  %v676_v12 = vsub.f32 %v1656_v15, %v668_v42  ;;  %v1395_v30 = vpop.eup %1394  ;;  %v1060_v54 = vsel %vm175_vm1, %v1052_v27, 0.0 }
 0x4a2   :  { %v662_v48 = vmul.f32 0.6931472, %v1395_v30  ;;  %v2042_v22 = vpop.xlane.xlu0 %946 }
 0x4a3   :  { %v2036_v20 = vpop.xlane.xlu1 %937  ;;  %v732_v32 = vsel %vm724_vm11, %v676_v12, 0.0  ;;  %v967_v35 = vadd.f32 %v955_v59, %v1803_v37 }
 0x4a4   :  { %1404 = vlog2.f32 %v2036_v20  ;;  %v1397_v40 = vpop.eup %1396  ;;  %v746_v58 = vsel %vm175_vm1, %v732_v32, 0.0  ;;  %v671_v37 = vadd.f32 %v662_v48, %v1839_v62 }
 0x4a5   :  { %v1399_v33 = vpop.eup %1398  ;;  %v652_v61 = vmul.f32 0.6931472, %v1397_v40  ;;  %747 = vadd.xlane.f32.xlu0 %v746_v58  ;;  %1061 = vadd.xlane.f32.xlu1 %v1060_v54  ;;  %v975_v9 = vsub.f32 %v1656_v15, %v967_v35  ;;  %v764_v15 = vmul.f32 %v676_v12, %v1879_v63 }
 0x4a6   :  { %v951_v27 = vmul.f32 0.6931472, %v1399_v33  ;;  %v679_v62 = vsub.f32 %v1694_v38, %v671_v37  ;;  %v2065_v63 = vpop.xlane.xlu0 %940 }
 0x4a7   :  { %v2047_v6 = vpop.xlane.xlu1 %647  ;;  %v1023_v42 = vsel %vm1015_vm12, %v975_v9, 0.0  ;;  %v666_v46 = vadd.f32 %v652_v61, %v1811_v41  ;;  %v778_v41 = vsel %vm175_vm1, %v764_v15, 0.0  ;;  %v1055_v40 = vmul.f32 %v975_v9, %v1901_v57 }
 0x4a8   :  { %1406 = vlog2.f32 %v2047_v6  ;;  %v1401_v14 = vpop.eup %1400  ;;  %v1037_v59 = vsel %vm175_vm1, %v1023_v42, 0.0  ;;  %v965_v58 = vadd.f32 %v951_v27, %v1823_v49  ;;  %v735_v33 = vsel %vm727_vm13, %v679_v62, 0.0 }
 0x4a9   :  { %1408 = vlog2.f32 %v2042_v22  ;;  %v961_v30 = vmul.f32 0.6931472, %v1401_v14  ;;  %1038 = vadd.xlane.f32.xlu0 %v1037_v59  ;;  %v674_v25 = vsub.f32 %v1675_v28, %v666_v46  ;;  %v1069_v24 = vsel %vm175_vm1, %v1055_v40, 0.0 }
 0x4aa   :  { %v973_v49 = vsub.f32 %v1675_v28, %v965_v58  ;;  %v755_v57 = vsel %vm175_vm1, %v735_v33, 0.0  ;;  %v767_v37 = vmul.f32 %v679_v62, %v1905_v7 }
 0x4ab   :  { %v2056_v32 = vpop.xlane.xlu1 %641  ;;  %v762_v48 = vmul.f32 %v674_v25, %v1913_v1  ;;  %v970_v54 = vadd.f32 %v961_v30, %v1847_v11  ;;  %v730_v9 = vsel %vm722_vm14, %v674_v25, 0.0 }
 0x4ac   :  { %v1403_v35 = vpop.eup %1402  ;;  %1410 = vlog2.f32 %v2056_v32  ;;  %v740_v14 = vsel %vm175_vm1, %v730_v9, 0.0  ;;  %v787_v59 = vsel %vm175_vm1, %v767_v37, 0.0  ;;  %v1021_v15 = vsel %vm1013_vm15, %v973_v49, 0.0 }
 0x4ad   :  { %779 = vadd.xlane.f32.xlu0 %v778_v41  ;;  %v772_v12 = vsel %vm175_vm1, %v762_v48, 0.0  ;;  %v658_v1 = vmul.f32 0.6931472, %v1403_v35  ;;  %1412 = vlog2.f32 %v2065_v63  ;;  %v2078_v11 = vsub.f32 %v1694_v38, %v970_v54 }
 0x4ae   :  { %773 = vadd.xlane.f32.xlu1 %v772_v12  ;;  %v1031_v26 = vsel %vm175_vm1, %v1021_v15, 0.0  ;;  %v1053_v62 = vmul.f32 %v973_v49, %v1883_v5 }
 0x4af   :  { %v669_v46 = vadd.f32 %v658_v1, %v1867_v53  ;;  %v1058_v38 = vmul.f32 %v2078_v11, %v1919_v44 }
 0x4b1   :  { %v1405_v61 = vpop.eup %1404  ;;  %1070 = vadd.xlane.f32.xlu0 %v1069_v24  ;;  %v677_v7 = vsub.f32 %v1724_v50, %v669_v46  ;;  %v1078_v48 = vsel %vm175_vm1, %v1058_v38, 0.0  ;;  %v1006_v24 = vpop.permute.xlu0 %1005 }
 0x4b2   :  { %v957_v42 = vmul.f32 0.6931472, %v1405_v61  ;;  %756 = vadd.xlane.f32.xlu1 %v755_v57  ;;  %vm1018_vm4 = vcmp.eq.f32.partialorder %v1979_v36, %v1006_v24 }
 0x4b3   :  { %v733_v41 = vsel %vm725_vm0, %v677_v7, 0.0  ;;  %v765_v61 = vmul.f32 %v677_v7, %v1925_v56  ;;  %v2274_v7 = vld [vmem:[#allocation16_spill] sm:$0xff] }
 0x4b4   :  { %v968_v53 = vadd.f32 %v957_v42, %v1887_v34  ;;  %v749_v58 = vsel %vm175_vm1, %v733_v41, 0.0  ;;  %1414 = vrcp.f32 %v2274_v7 }
 0x4b5   :  { %v1407_v19 = vpop.eup %1406  ;;  %741 = vadd.xlane.f32.xlu0 %v740_v14  ;;  %v781_v9 = vsel %vm175_vm1, %v765_v61, 0.0  ;;  %v2272_v14 = vld [vmem:[#allocation13_spill] sm:$0xff] }
 0x4b6   :  { %v1409_v28 = vpop.eup %1408  ;;  %v664_v27 = vmul.f32 0.6931472, %v1407_v19  ;;  %788 = vadd.xlane.f32.xlu1 %v787_v59  ;;  %v976_v34 = vsub.f32 %v1724_v50, %v968_v53  ;;  %v2275_v53 = vld [vmem:[#allocation17_spill] sm:$0xff] }
 0x4b7   :  { %v963_v25 = vmul.f32 0.6931472, %v1409_v28  ;;  %1416 = vrcp.f32 %v2275_v53 }
 0x4b8   :  { %v672_v30 = vadd.f32 %v664_v27, %v1837_v60  ;;  %v1063_v60 = vsel %vm175_vm1, %v1053_v62, 0.0  ;;  %v1024_v54 = vsel %vm1016_vm3, %v976_v34, 0.0  ;;  %v2273_v27 = vld [vmem:[#allocation12_spill] sm:$0xff] }
 0x4b9   :  { %1032 = vadd.xlane.f32.xlu0 %v1031_v26  ;;  %v1411_v35 = vpop.eup %1410  ;;  %v971_v5 = vadd.f32 %v963_v25, %v1845_v10  ;;  %v1040_v10 = vsel %vm175_vm1, %v1024_v54, 0.0 }
 0x4ba   :  { %v680_v44 = vsub.f32 %v1697_v39, %v672_v30  ;;  %1079 = vadd.xlane.f32.xlu1 %v1078_v48  ;;  %v1413_v40 = vpop.eup %1412  ;;  %v660_v8 = vmul.f32 0.6931472, %v1411_v35  ;;  %v2276_v30 = vld [vmem:[#allocation5_spill] sm:$0xff]  ;;  %v2278_v35 = vld [vmem:[#allocation6_spill] sm:$0xff] }
 0x4bb   :  { %v979_v18 = vsub.f32 %v1697_v39, %v971_v5  ;;  %v959_v33 = vmul.f32 0.6931472, %v1413_v40  ;;  %vm817_vm8 = vcmp.eq.s32.totalorder %v2276_v30, 0  ;;  %vm545_vm9 = vcmp.eq.s32.totalorder %v2276_v30, 4 }
 0x4bc   :  { %v736_v12 = vsel %vm728_vm2, %v680_v44, 0.0  ;;  %v768_v1 = vmul.f32 %v680_v44, %v1947_v3  ;;  %v670_v55 = vadd.f32 %v660_v8, %v1865_v47  ;;  %v1056_v3 = vmul.f32 %v976_v34, %v1935_v43  ;;  %v2277_v44 = vld [vmem:[#allocation18_spill] sm:$0xff] }
 0x4bd   :  { %1064 = vadd.xlane.f32.xlu0 %v1063_v60  ;;  %v758_v50 = vsel %vm175_vm1, %v736_v12, 0.0  ;;  %v1059_v57 = vmul.f32 %v979_v18, %v1931_v45  ;;  %v969_v37 = vadd.f32 %v959_v33, %v1885_v31  ;;  %v1026_v43 = vsel %vm1018_vm4, %v2078_v11, 0.0  ;;  %v1010_v11 = vpop.permute.xlu1 %1009 }
 0x4be   :  { %750 = vadd.xlane.f32.xlu1 %v749_v58  ;;  %v790_v49 = vsel %vm175_vm1, %v768_v1, 0.0  ;;  %v678_v39 = vsub.f32 %v1727_v51, %v670_v55  ;;  %v1072_v56 = vsel %vm175_vm1, %v1056_v3, 0.0  ;;  %v1046_v46 = vsel %vm175_vm1, %v1026_v43, 0.0 }
 0x4bf   :  { %v1081_v47 = vsel %vm175_vm1, %v1059_v57, 0.0  ;;  %v977_v42 = vsub.f32 %v1727_v51, %v969_v37  ;;  %vm1019_vm7 = vcmp.eq.f32.partialorder %v1979_v36, %v1010_v11  ;;  %1418 = vrcp.f32 %v2277_v44  ;;  %v2280_v11 = vld [vmem:[#allocation7_spill] sm:$0xff] }
 0x4c0   :  { %v734_v45 = vsel %vm726_vm5, %v678_v39, 0.0  ;;  %v766_v28 = vmul.f32 %v678_v39, %v2272_v14  ;;  %v1027_v15 = vsel %vm1019_vm7, %v979_v18, 0.0  ;;  %v550_v41 = vsel %vm545_vm9, %v2278_v35, 0.0 }
 0x4c1   :  { %759 = vadd.xlane.f32.xlu0 %v758_v50  ;;  %v752_v31 = vsel %vm175_vm1, %v734_v45, 0.0  ;;  %v1025_v17 = vsel %vm1017_vm6, %v977_v42, 0.0  ;;  %v1057_v59 = vmul.f32 %v977_v42, %v2273_v27  ;;  %v1049_v38 = vsel %vm175_vm1, %v1027_v15, 0.0  ;;  %v1415_v48 = vpop.eup %1414 }
 0x4c2   :  { %1041 = vadd.xlane.f32.xlu1 %v1040_v10  ;;  %v1043_v19 = vsel %vm175_vm1, %v1025_v17, 0.0  ;;  %v784_v51 = vsel %vm175_vm1, %v766_v28, 0.0  ;;  %vm1108_vm10 = vcmp.eq.s32.totalorder %v2276_v30, 1  ;;  %1420 = vrcp.f32 %v1981_v2  ;;  %v2279_v2 = vld [vmem:[#allocation8_spill] sm:$0xff] }
 0x4c3   :  { %v1075_v23 = vsel %vm175_vm1, %v1057_v59, 0.0  ;;  %vm836_vm1 = vcmp.eq.s32.totalorder %v2276_v30, 2  ;;  %vm1127_vm11 = vcmp.eq.s32.totalorder %v2276_v30, 3  ;;  %1422 = vrcp.f32 %v1990_v4 }
 0x4c4   :  { %v1417_v54 = vpop.eup %1416  ;;  %1424 = vrcp.f32 %v2000_v16 }
 0x4c5   :  { %791 = vadd.xlane.f32.xlu0 %v790_v49  ;;  %1426 = vrcp.f32 %v2008_v0 }
 0x4c6   :  { %782 = vadd.xlane.f32.xlu1 %v781_v9  ;;  %v548_v9 = vsel %vm545_vm9, %v2279_v2, 0.0  ;;  %1428 = vrcp.f32 %v2002_v13 }
 0x4c7   :  { %1430 = vrcp.f32 %v1988_v52 }
 0x4c8   :  { %1432 = vrcp.f32 %v2047_v6 }
 0x4c9   :  { %1082 = vadd.xlane.f32.xlu0 %v1081_v47  ;;  %1434 = vrcp.f32 %v2027_v21 }
 0x4ca   :  { %1073 = vadd.xlane.f32.xlu1 %v1072_v56  ;;  %1436 = vrcp.f32 %v2017_v29 }
 0x4cb   :  { %1438 = vrcp.f32 %v2036_v20 }
 0x4cc   :  { %v1419_v57 = vpop.eup %1418  ;;  %1440 = vrcp.f32 %v2056_v32 }
 0x4cd   :  { %753 = vadd.xlane.f32.xlu0 %v752_v31  ;;  %1442 = vrcp.f32 %v2042_v22 }
 0x4ce   :  { %1047 = vadd.xlane.f32.xlu1 %v1046_v46  ;;  %1444 = vrcp.f32 %v2065_v63 }
 0x4cf   :  { %v1421_v31 = vpop.eup %1420 }
 0x4d0   :  { %v1423_v59 = vpop.eup %1422 }
 0x4d1   :  { %1044 = vadd.xlane.f32.xlu0 %v1043_v19 }
 0x4d5   :  { %785 = vadd.xlane.f32.xlu0 %v784_v51 }
 0x4d9   :  { %1076 = vadd.xlane.f32.xlu0 %v1075_v23  ;;  %v551_v23 = vsel %vm545_vm9, %v2280_v11, 0.0  ;;  %v2284_v11 = vld [vmem:[#allocation14_spill] sm:$0xff] }
 0x4dd   :  { %1050 = vadd.xlane.f32.xlu0 %v1049_v38 }
 0x51a   :  { %v745_v25 = vpop.xlane.xlu1 %744 }
 0x51b   :  { %v777_v26 = vpop.xlane.xlu0 %776  ;;  %v822_v36 = vsel %vm817_vm8, %v745_v25, 0.0  ;;  %v1425_v25 = vpop.eup %1424 }
 0x51c   :  { %v795_v62 = vsub.f32 0.0, %v777_v26  ;;  %v830_v5 = vadd.f32 %v822_v36, %v550_v41 }
 0x51e   :  { %v806_v34 = vmul.f32 %v1415_v48, %v795_v62  ;;  %v1036_v60 = vpop.xlane.xlu1 %1035  ;;  %v1427_v62 = vpop.eup %1426 }
 0x51f   :  { %v1113_v50 = vsel %vm1108_vm10, %v1036_v60, 0.0 }
 0x520   :  { %v841_v40 = vsel %vm836_vm1, %v806_v34, 0.0 }
 0x521   :  { %v849_v8 = vadd.f32 %v841_v40, %v830_v5  ;;  %v2281_v5 = vld [vmem:[#allocation9_spill] sm:$0xff] }
 0x522   :  { %v1068_v58 = vpop.xlane.xlu1 %1067  ;;  %v549_v40 = vsel %vm545_vm9, %v2281_v5, 0.0 }
 0x523   :  { %v1086_v12 = vsub.f32 0.0, %v1068_v58  ;;  %v1121_v18 = vadd.f32 %v1113_v50, %v849_v8 }
 0x525   :  { %v1097_v1 = vmul.f32 %v1417_v54, %v1086_v12 }
 0x526   :  { %v739_v10 = vpop.xlane.xlu1 %738 }
 0x527   :  { %v1132_v33 = vsel %vm1127_vm11, %v1097_v1, 0.0  ;;  %v771_v55 = vpop.xlane.xlu0 %770  ;;  %v820_v24 = vsel %vm817_vm8, %v739_v10, 0.0  ;;  %v2282_v10 = vld [vmem:[#allocation11_spill] sm:$0xff] }
 0x528   :  { %v1140_v61 = vadd.f32 %v1132_v33, %v1121_v18  ;;  %v793_v49 = vsub.f32 0.0, %v771_v55  ;;  %v828_v37 = vadd.f32 %v820_v24, %v548_v9  ;;  %v1429_v18 = vpop.eup %1428 }
 0x52a   :  { %1148 = vst [vmem:[#allocation2 + $0x10] sm:$0xff] %v1140_v61  ;;  %v802_v3 = vmul.f32 %v1419_v57, %v793_v49  ;;  %v1030_v39 = vpop.xlane.xlu1 %1029  ;;  %v554_v61 = vsel %vm545_vm9, %v2282_v10, 0.0  ;;  %v2285_v10 = vld [vmem:[#allocation15_spill] sm:$0xff] }
 0x52b   :  { %v1111_v46 = vsel %vm1108_vm10, %v1030_v39, 0.0 }
 0x52c   :  { %v839_v47 = vsel %vm836_vm1, %v802_v3, 0.0 }
 0x52d   :  { %v847_v56 = vadd.f32 %v839_v47, %v828_v37 }
 0x52e   :  { %v1062_v45 = vpop.xlane.xlu1 %1061  ;;  %v748_v42 = vpop.xlane.xlu0 %747 }
 0x52f   :  { %v1084_v43 = vsub.f32 0.0, %v1062_v45  ;;  %v1119_v19 = vadd.f32 %v1111_v46, %v847_v56  ;;  %v823_v51 = vsel %vm817_vm8, %v748_v42, 0.0  ;;  %v1431_v45 = vpop.eup %1430 }
 0x530   :  { %v831_v7 = vadd.f32 %v823_v51, %v551_v23  ;;  %v552_v23 = vsel %vm545_vm9, %v2284_v11, 0.0 }
 0x531   :  { %v1093_v17 = vmul.f32 %v1421_v31, %v1084_v43  ;;  %v2283_v31 = vld [vmem:[#allocation10_spill] sm:$0xff] }
 0x532   :  { %v1039_v14 = vpop.xlane.xlu0 %1038  ;;  %v555_v21 = vsel %vm545_vm9, %v2283_v31, 0.0 }
 0x533   :  { %v1130_v4 = vsel %vm1127_vm11, %v1093_v17, 0.0  ;;  %v1114_v44 = vsel %vm1108_vm10, %v1039_v14, 0.0 }
 0x534   :  { %v1138_v28 = vadd.f32 %v1130_v4, %v1119_v19 }
 0x536   :  { %1146 = vst [vmem:[#allocation2] sm:$0xff] %v1138_v28  ;;  %v780_v16 = vpop.xlane.xlu0 %779 }
 0x537   :  { %v796_v0 = vsub.f32 0.0, %v780_v16  ;;  %v774_v27 = vpop.xlane.xlu1 %773  ;;  %v1433_v16 = vpop.eup %1432 }
 0x538   :  { %v794_v38 = vsub.f32 0.0, %v774_v27  ;;  %v1435_v27 = vpop.eup %1434 }
 0x539   :  { %v808_v15 = vmul.f32 %v1423_v59, %v796_v0 }
 0x53a   :  { %v1071_v53 = vpop.xlane.xlu0 %1070  ;;  %v804_v35 = vmul.f32 %v1427_v62, %v794_v38 }
 0x53b   :  { %v842_v13 = vsel %vm836_vm1, %v808_v15, 0.0  ;;  %v1087_v26 = vsub.f32 0.0, %v1071_v53  ;;  %v757_v36 = vpop.xlane.xlu1 %756 }
 0x53c   :  { %v850_v48 = vadd.f32 %v842_v13, %v831_v7  ;;  %v826_v54 = vsel %vm817_vm8, %v757_v36, 0.0  ;;  %v840_v33 = vsel %vm836_vm1, %v804_v35, 0.0 }
 0x53d   :  { %v1099_v41 = vmul.f32 %v1425_v25, %v1087_v26  ;;  %v834_v57 = vadd.f32 %v826_v54, %v554_v61  ;;  %v1437_v26 = vpop.eup %1436  ;;  %v553_v61 = vsel %vm545_vm9, %v2285_v10, 0.0 }
 0x53e   :  { %v1122_v34 = vadd.f32 %v1114_v44, %v850_v48  ;;  %v742_v60 = vpop.xlane.xlu0 %741  ;;  %v1439_v44 = vpop.eup %1438 }
 0x53f   :  { %v1133_v52 = vsel %vm1127_vm11, %v1099_v41, 0.0  ;;  %v821_v8 = vsel %vm817_vm8, %v742_v60, 0.0  ;;  %v789_v58 = vpop.xlane.xlu1 %788 }
 0x540   :  { %v1141_v12 = vadd.f32 %v1133_v52, %v1122_v34  ;;  %v829_v50 = vadd.f32 %v821_v8, %v549_v40  ;;  %v799_v1 = vsub.f32 0.0, %v789_v58 }
 0x542   :  { %1149 = vst [vmem:[#allocation2 + $0x18] sm:$0xff] %v1141_v12  ;;  %v814_v55 = vmul.f32 %v1429_v18, %v799_v1  ;;  %v848_v24 = vadd.f32 %v840_v33, %v829_v50  ;;  %v1033_v49 = vpop.xlane.xlu0 %1032  ;;  %v1441_v33 = vpop.eup %1440 }
 0x543   :  { %v1080_v2 = vpop.xlane.xlu1 %1079  ;;  %v1112_v37 = vsel %vm1108_vm10, %v1033_v49, 0.0 }
 0x544   :  { %v845_v9 = vsel %vm836_vm1, %v814_v55, 0.0  ;;  %v1120_v42 = vadd.f32 %v1112_v37, %v848_v24  ;;  %v1090_v15 = vsub.f32 0.0, %v1080_v2  ;;  %v1443_v2 = vpop.eup %1442 }
 0x545   :  { %v853_v3 = vadd.f32 %v845_v9, %v834_v57 }
 0x546   :  { %v1065_v39 = vpop.xlane.xlu0 %1064  ;;  %v1105_v41 = vmul.f32 %v1437_v26, %v1090_v15 }
 0x547   :  { %v1085_v47 = vsub.f32 0.0, %v1065_v39  ;;  %v751_v56 = vpop.xlane.xlu1 %750  ;;  %v1445_v39 = vpop.eup %1444 }
 0x548   :  { %v824_v51 = vsel %vm817_vm8, %v751_v56, 0.0  ;;  %v1136_v22 = vsel %vm1127_vm11, %v1105_v41, 0.0 }
 0x549   :  { %v1095_v6 = vmul.f32 %v1431_v45, %v1085_v47  ;;  %v832_v53 = vadd.f32 %v824_v51, %v552_v23 }
 0x54a   :  { %v760_v43 = vpop.xlane.xlu0 %759 }
 0x54b   :  { %v1131_v46 = vsel %vm1127_vm11, %v1095_v6, 0.0  ;;  %v827_v29 = vsel %vm817_vm8, %v760_v43, 0.0  ;;  %v1042_v17 = vpop.xlane.xlu1 %1041 }
 0x54c   :  { %v1139_v19 = vadd.f32 %v1131_v46, %v1120_v42  ;;  %v835_v14 = vadd.f32 %v827_v29, %v555_v21  ;;  %v1115_v34 = vsel %vm1108_vm10, %v1042_v17, 0.0 }
 0x54e   :  { %1147 = vst [vmem:[#allocation2 + $0x8] sm:$0xff] %v1139_v19  ;;  %v792_v4 = vpop.xlane.xlu0 %791 }
 0x54f   :  { %v800_v28 = vsub.f32 0.0, %v792_v4  ;;  %v783_v20 = vpop.xlane.xlu1 %782 }
 0x550   :  { %v797_v0 = vsub.f32 0.0, %v783_v20 }
 0x551   :  { %v816_v59 = vmul.f32 %v1433_v16, %v800_v28 }
 0x552   :  { %v810_v38 = vmul.f32 %v1435_v27, %v797_v0  ;;  %v1083_v7 = vpop.xlane.xlu0 %1082 }
 0x553   :  { %v1074_v25 = vpop.xlane.xlu1 %1073  ;;  %v846_v13 = vsel %vm836_vm1, %v816_v59, 0.0  ;;  %v1091_v55 = vsub.f32 0.0, %v1083_v7 }
 0x554   :  { %v843_v36 = vsel %vm836_vm1, %v810_v38, 0.0  ;;  %v1088_v62 = vsub.f32 0.0, %v1074_v25  ;;  %v854_v48 = vadd.f32 %v846_v13, %v835_v14 }
 0x555   :  { %v851_v35 = vadd.f32 %v843_v36, %v832_v53  ;;  %v1107_v47 = vmul.f32 %v1443_v2, %v1091_v55 }
 0x556   :  { %v1101_v32 = vmul.f32 %v1439_v44, %v1088_v62  ;;  %v754_v60 = vpop.xlane.xlu0 %753 }
 0x557   :  { %v1123_v5 = vadd.f32 %v1115_v34, %v851_v35  ;;  %v1048_v40 = vpop.xlane.xlu1 %1047  ;;  %v825_v63 = vsel %vm817_vm8, %v754_v60, 0.0  ;;  %v1137_v29 = vsel %vm1127_vm11, %v1107_v47, 0.0 }
 0x558   :  { %v1134_v52 = vsel %vm1127_vm11, %v1101_v32, 0.0  ;;  %v1117_v8 = vsel %vm1108_vm10, %v1048_v40, 0.0  ;;  %v833_v49 = vadd.f32 %v825_v63, %v553_v61 }
 0x559   :  { %v1142_v58 = vadd.f32 %v1134_v52, %v1123_v5  ;;  %v1125_v12 = vadd.f32 %v1117_v8, %v853_v3 }
 0x55a   :  { %v1045_v54 = vpop.xlane.xlu0 %1044 }
 0x55b   :  { %1150 = vst [vmem:[#allocation2 + $0x20] sm:$0xff] %v1142_v58  ;;  %v1144_v50 = vadd.f32 %v1136_v22, %v1125_v12  ;;  %v1116_v56 = vsel %vm1108_vm10, %v1045_v54, 0.0 }
 0x55d   :  { %1152 = vst [vmem:[#allocation2 + $0x30] sm:$0xff] %v1144_v50 }
 0x55e   :  { %v786_v1 = vpop.xlane.xlu0 %785 }
 0x55f   :  { %v798_v18 = vsub.f32 0.0, %v786_v1 }
 0x561   :  { %v812_v24 = vmul.f32 %v1441_v33, %v798_v18 }
 0x562   :  { %v1077_v57 = vpop.xlane.xlu0 %1076 }
 0x563   :  { %v844_v9 = vsel %vm836_vm1, %v812_v24, 0.0  ;;  %v1089_v3 = vsub.f32 0.0, %v1077_v57 }
 0x564   :  { %v852_v37 = vadd.f32 %v844_v9, %v833_v49 }
 0x565   :  { %v1103_v45 = vmul.f32 %v1445_v39, %v1089_v3 }
 0x566   :  { %v1124_v6 = vadd.f32 %v1116_v56, %v852_v37  ;;  %v1051_v42 = vpop.xlane.xlu0 %1050 }
 0x567   :  { %v1135_v43 = vsel %vm1127_vm11, %v1103_v45, 0.0  ;;  %v1118_v31 = vsel %vm1108_vm10, %v1051_v42, 0.0 }
 0x568   :  { %v1143_v21 = vadd.f32 %v1135_v43, %v1124_v6  ;;  %v1126_v46 = vadd.f32 %v1118_v31, %v854_v48 }
 0x56a   :  { %1151 = vst [vmem:[#allocation2 + $0x28] sm:$0xff] %v1143_v21  ;;  %v1145_v17 = vadd.f32 %v1137_v29, %v1126_v46 }
 0x56c   :  { %1153 = vst [vmem:[#allocation2 + $0x38] sm:$0xff] %v1145_v17 }
 0x56d   :  { %1457 = shalt.err (!%p1454_p4)
}
 0x56e   :  { %s1471_s8 = smov 128   ;;  %s1472_s9 = smov 8  }
 0x56f   :  { %1165 = dma.vmem_to_hbm [thread:$0]  %s1160_s6, 1024, %s2248_s2, [#allocation3], %s1471_s8, %s1471_s8, %s1472_s9  }
 0x570   :  { %1466 = dma.done.wait [#allocation3], 1024  }
 0x571   :  { %1467 = vsyncadd [#allocation3], 4294966272 }
 0x572   :  { %1169 = vsyncpa [#allocation3], 1 }

</bundles_post_ra>
